<compile_context>
chip_gen: v6e
topology: v6e:2x2x1
jax: 0.10.0
libtpu: 0.0.40
codegen_flags: <defaults>
</compile_context>

<pallas_src>
import math
import functools

import jax
import jax.numpy as jnp
from jax.experimental import pallas as pl
from jax.experimental.pallas import tpu as pltpu


def _extractor_kernel(x_ref,
                      wq_ref, bq_ref, wk_ref, bk_ref, wv_ref, bv_ref,
                      wo_ref, bo_ref,
                      a2_ref, b2_ref,
                      w1_ref, b1_ref, w2_ref, b2f_ref,
                      out_ref,
                      *, num_header, eps):
    TB, L, D = x_ref.shape
    dk = D // num_header
    N = TB * L

    x = x_ref[...].reshape(N, D)            # (N, D) f32: all tokens in this block

    a2 = a2_ref[...]                        # (1, D) LayerNorm gain (shared by both norms)
    b2 = b2_ref[...]                        # (1, D) LayerNorm bias
    inv_dm1 = 1.0 / (D - 1)

    def layernorm(v):                       # v: (N, D) f32
        mean = jnp.mean(v, axis=-1, keepdims=True)
        c = v - mean
        # torch.Tensor.std is unbiased (N-1); PyTorch module adds eps to std
        var = jnp.sum(c * c, axis=-1, keepdims=True) * inv_dm1
        inv = pl.reciprocal(jnp.sqrt(var) + eps, approx=True)
        return a2 * (c * inv) + b2

    # ----- sublayer 1: multi-head self-attention -----
    y = layernorm(x)
    yb = y.astype(jnp.bfloat16)
    q = jnp.dot(yb, wq_ref[...], preferred_element_type=jnp.float32) + bq_ref[...]
    k = jnp.dot(yb, wk_ref[...], preferred_element_type=jnp.float32) + bk_ref[...]
    v = jnp.dot(yb, wv_ref[...], preferred_element_type=jnp.float32) + bv_ref[...]

    # fold 1/sqrt(dk) into q: O(N*D) VALU work instead of O(H*L*L)
    q = q * (1.0 / math.sqrt(dk))

    q3 = q.reshape(TB, L, D)                # leading-dim split only (cheap)
    k3 = k.reshape(TB, L, D)
    v3 = v.reshape(TB, L, D)

    head_outs = []
    for h in range(num_header):             # static unroll over heads
        lo = h * dk
        qh = q3[:, :, lo:lo + dk].astype(jnp.bfloat16)     # (TB, L, dk)
        kh = k3[:, :, lo:lo + dk].astype(jnp.bfloat16)
        vh = v3[:, :, lo:lo + dk].astype(jnp.bfloat16)
        # batched over TB, contracting dk -- no explicit kh.T
        s = jnp.einsum('bqd,bkd->bqk', qh, kh,
                       preferred_element_type=jnp.float32)  # (TB, L, L) f32
        s = s - jnp.max(s, axis=-1, keepdims=True)
        p = jnp.exp(s)
        p = p * pl.reciprocal(jnp.sum(p, axis=-1, keepdims=True), approx=True)
        head_outs.append(
            jnp.einsum('bqk,bkd->bqd', p.astype(jnp.bfloat16), vh,
                       preferred_element_type=jnp.float32))  # (TB, L, dk) f32
    att = jnp.concatenate(head_outs, axis=-1).reshape(N, D)  # (N, D) f32

    mha = jnp.dot(att.astype(jnp.bfloat16), wo_ref[...],
                  preferred_element_type=jnp.float32) + bo_ref[...]
    x = x + mha                              # dropout == identity (eval mode)

    # ----- sublayer 2: position-wise feed-forward -----
    y = layernorm(x)
    h1 = jnp.dot(y.astype(jnp.bfloat16), w1_ref[...],
                 preferred_element_type=jnp.float32) + b1_ref[...]
    h1 = jnp.maximum(h1, 0.0)
    ff = jnp.dot(h1.astype(jnp.bfloat16), w2_ref[...],
                 preferred_element_type=jnp.float32) + b2f_ref[...]
    x = x + ff

    out_ref[...] = x.reshape(TB, L, D)


def _choose_batch_tile(B, L, target_rows=256, max_rows=512):
    """Largest divisor of B giving TB*L rows per step, preferring >= target_rows."""
    divs = [d for d in range(1, B + 1) if B % d == 0]
    feasible = [d for d in divs if d * L <= max_rows] or [divs[0]]
    for d in feasible:
        if d * L >= target_rows:
            return d
    return feasible[-1]


def extractor_block(x, params, num_header, eps=1e-6):
    B, L, D = x.shape
    Fdim = params["w1"].shape[1]

    TB = _choose_batch_tile(B, L)
    grid = (B // TB,)

    # bf16 weights for the MXU (halves HBM->VMEM DMA + VMEM footprint);
    # biases / LayerNorm params stay f32.
    wq = params["wq"].astype(jnp.bfloat16)
    wk = params["wk"].astype(jnp.bfloat16)
    wv = params["wv"].astype(jnp.bfloat16)
    wo = params["wo"].astype(jnp.bfloat16)
    w1 = params["w1"].astype(jnp.bfloat16)
    w2 = params["w2"].astype(jnp.bfloat16)

    kernel = functools.partial(_extractor_kernel, num_header=num_header, eps=eps)

    def const_spec(shape):
        n = len(shape)
        return pl.BlockSpec(shape, lambda b, _n=n: (0,) * _n)

    in_specs = [
        pl.BlockSpec((TB, L, D), lambda b: (b, 0, 0)),   # x
        const_spec((D, D)), const_spec((1, D)),          # wq, bq
        const_spec((D, D)), const_spec((1, D)),          # wk, bk
        const_spec((D, D)), const_spec((1, D)),          # wv, bv
        const_spec((D, D)), const_spec((1, D)),          # wo, bo
        const_spec((1, D)), const_spec((1, D)),          # layernorm a_2, b_2
        const_spec((D, Fdim)), const_spec((1, Fdim)),    # w1, b1
        const_spec((Fdim, D)), const_spec((1, D)),       # w2, b2
    ]
    out_spec = pl.BlockSpec((TB, L, D), lambda b: (b, 0, 0))

    # Explicit scoped-VMEM budget: bf16 weights + f32 biases + double-buffered
    # activation slabs + in-kernel intermediates, with headroom.
    weight_bytes = 2 * (4 * D * D + 2 * D * Fdim) + 4 * (8 * D + Fdim)
    act_bytes = 4 * TB * L * D * 2 * 2                    # x + out, double-buffered
    scratch_bytes = 4 * TB * L * (6 * D + Fdim) + 4 * TB * num_header * L * L
    vmem_limit = int(min(64 * 1024 * 1024,
                         max(32 * 1024 * 1024,
                             3 * (weight_bytes + act_bytes + scratch_bytes))))

    return pl.pallas_call(
        kernel,
        out_shape=jax.ShapeDtypeStruct((B, L, D), jnp.float32),
        grid_spec=pltpu.PrefetchScalarGridSpec(
            num_scalar_prefetch=0,
            grid=grid,
            in_specs=in_specs,
            out_specs=out_spec,
        ),
        compiler_params=pltpu.CompilerParams(
            dimension_semantics=("parallel",),
            vmem_limit_bytes=vmem_limit,
        ),
    )(x,
      wq, params["bq"], wk, params["bk"], wv, params["bv"],
      wo, params["bo"],
      params["a2"], params["b2"],
      w1, params["b1"], w2, params["b2f"])


def reference_block(x, params, num_header, eps=1e-6):
    """Pure-JAX f32 reference of the PyTorch forward (dropout = identity)."""
    B, L, D = x.shape
    dk = D // num_header

    def layernorm(v):
        mean = jnp.mean(v, axis=-1, keepdims=True)
        var = jnp.sum((v - mean) ** 2, axis=-1, keepdims=True) / (D - 1)
        std = jnp.sqrt(var)
        return params["a2"] * (v - mean) / (std + eps) + params["b2"]

    y = layernorm(x)
    q = y @ params["wq"] + params["bq"]
    k = y @ params["wk"] + params["bk"]
    v = y @ params["wv"] + params["bv"]
    qh = q.reshape(B, L, num_header, dk).transpose(0, 2, 1, 3)
    kh = k.reshape(B, L, num_header, dk).transpose(0, 2, 1, 3)
    vh = v.reshape(B, L, num_header, dk).transpose(0, 2, 1, 3)
    s = jnp.einsum("bhqd,bhkd->bhqk", qh, kh) / math.sqrt(dk)
    p = jax.nn.softmax(s, axis=-1)
    o = jnp.einsum("bhqk,bhkd->bhqd", p, vh).transpose(0, 2, 1, 3).reshape(B, L, D)
    mha = o @ params["wo"] + params["bo"]
    x = x + mha

    y = layernorm(x)
    ff = jnp.maximum(y @ params["w1"] + params["b1"], 0.0) @ params["w2"] + params["b2f"]
    return x + ff


if __name__ == "__main__":
    # Small shapes consistent with the module: dim_model=32, 4 heads, ff=64.
    B, L, D, H, Fdim = 2, 8, 32, 4, 64

    key = jax.random.PRNGKey(0)
    ks = jax.random.split(key, 16)

    def w(k, shape, scale=0.1):
        return (scale * jax.random.normal(k, shape)).astype(jnp.float32)

    params = {
        "wq": w(ks[0], (D, D)),  "bq": w(ks[1], (1, D)),
        "wk": w(ks[2], (D, D)),  "bk": w(ks[3], (1, D)),
        "wv": w(ks[4], (D, D)),  "bv": w(ks[5], (1, D)),
        "wo": w(ks[6], (D, D)),  "bo": w(ks[7], (1, D)),
        "a2": jnp.ones((1, D), jnp.float32),    # LayerNorm gain (init = ones)
        "b2": jnp.zeros((1, D), jnp.float32),   # LayerNorm bias (init = zeros)
        "w1": w(ks[8], (D, Fdim)), "b1": w(ks[9], (1, Fdim)),
        "w2": w(ks[10], (Fdim, D)), "b2f": w(ks[11], (1, D)),
    }

    x = jax.random.normal(ks[12], (B, L, D), dtype=jnp.float32)

    out = extractor_block(x, params, num_header=H)
    out = jax.block_until_ready(out)

    ref = reference_block(x, params, num_header=H)
    assert out.shape == (B, L, D)
    # bf16 matmul inputs + approx reciprocals => slightly looser tolerance vs f32 ref
    assert jnp.allclose(out, ref, atol=3e-2, rtol=3e-2), "mismatch vs JAX reference"

    print("KERNEL_OK")
</pallas_src>

<mosaic_0001>
module attributes {stable_mosaic.version = 11 : i64} {
  func.func @_extractor_kernel(%arg0: i32, %arg1: memref<2x8x32xf32, #tpu.memory_space<vmem>>, %arg2: memref<32x32xbf16, #tpu.memory_space<vmem>>, %arg3: memref<1x32xf32, #tpu.memory_space<vmem>>, %arg4: memref<32x32xbf16, #tpu.memory_space<vmem>>, %arg5: memref<1x32xf32, #tpu.memory_space<vmem>>, %arg6: memref<32x32xbf16, #tpu.memory_space<vmem>>, %arg7: memref<1x32xf32, #tpu.memory_space<vmem>>, %arg8: memref<32x32xbf16, #tpu.memory_space<vmem>>, %arg9: memref<1x32xf32, #tpu.memory_space<vmem>>, %arg10: memref<1x32xf32, #tpu.memory_space<vmem>>, %arg11: memref<1x32xf32, #tpu.memory_space<vmem>>, %arg12: memref<32x64xbf16, #tpu.memory_space<vmem>>, %arg13: memref<1x64xf32, #tpu.memory_space<vmem>>, %arg14: memref<64x32xbf16, #tpu.memory_space<vmem>>, %arg15: memref<1x32xf32, #tpu.memory_space<vmem>>, %arg16: memref<2x8x32xf32, #tpu.memory_space<vmem>>) attributes {dimension_semantics = [#tpu.dimension_semantics<parallel>], iteration_bounds = array<i64: 1>, scalar_prefetch = 0 : i64, scratch_operands = 0 : i64, tpu.core_type = #tpu.core_type<tc>, window_params = [{transform_indices = @transform_0, window_bounds = array<i64: 2, 8, 32>}, {pipeline_mode = #tpu.pipeline_mode<synchronous>, transform_indices = @transform_1, window_bounds = array<i64: 32, 32>}, {pipeline_mode = #tpu.pipeline_mode<synchronous>, transform_indices = @transform_2, window_bounds = array<i64: 1, 32>}, {pipeline_mode = #tpu.pipeline_mode<synchronous>, transform_indices = @transform_3, window_bounds = array<i64: 32, 32>}, {pipeline_mode = #tpu.pipeline_mode<synchronous>, transform_indices = @transform_4, window_bounds = array<i64: 1, 32>}, {pipeline_mode = #tpu.pipeline_mode<synchronous>, transform_indices = @transform_5, window_bounds = array<i64: 32, 32>}, {pipeline_mode = #tpu.pipeline_mode<synchronous>, transform_indices = @transform_6, window_bounds = array<i64: 1, 32>}, {pipeline_mode = #tpu.pipeline_mode<synchronous>, transform_indices = @transform_7, window_bounds = array<i64: 32, 32>}, {pipeline_mode = #tpu.pipeline_mode<synchronous>, transform_indices = @transform_8, window_bounds = array<i64: 1, 32>}, {pipeline_mode = #tpu.pipeline_mode<synchronous>, transform_indices = @transform_9, window_bounds = array<i64: 1, 32>}, {pipeline_mode = #tpu.pipeline_mode<synchronous>, transform_indices = @transform_10, window_bounds = array<i64: 1, 32>}, {pipeline_mode = #tpu.pipeline_mode<synchronous>, transform_indices = @transform_11, window_bounds = array<i64: 32, 64>}, {pipeline_mode = #tpu.pipeline_mode<synchronous>, transform_indices = @transform_12, window_bounds = array<i64: 1, 64>}, {pipeline_mode = #tpu.pipeline_mode<synchronous>, transform_indices = @transform_13, window_bounds = array<i64: 64, 32>}, {pipeline_mode = #tpu.pipeline_mode<synchronous>, transform_indices = @transform_14, window_bounds = array<i64: 1, 32>}, {transform_indices = @transform_15, window_bounds = array<i64: 2, 8, 32>}]} {
    %c0 = arith.constant 0 : index
    %c0_0 = arith.constant 0 : index
    %c0_1 = arith.constant 0 : index
    %0 = vector.load %arg1[%c0, %c0_0, %c0_1] : memref<2x8x32xf32, #tpu.memory_space<vmem>>, vector<2x8x32xf32>
    %1 = vector.shape_cast %0 : vector<2x8x32xf32> to vector<16x32xf32>
    %c0_2 = arith.constant 0 : index
    %c0_3 = arith.constant 0 : index
    %2 = vector.load %arg10[%c0_2, %c0_3] : memref<1x32xf32, #tpu.memory_space<vmem>>, vector<1x32xf32>
    %c0_4 = arith.constant 0 : index
    %c0_5 = arith.constant 0 : index
    %3 = vector.load %arg11[%c0_4, %c0_5] : memref<1x32xf32, #tpu.memory_space<vmem>>, vector<1x32xf32>
    %cst = arith.constant dense<0.000000e+00> : vector<16xf32>
    %4 = vector.multi_reduction <add>, %1, %cst [1] : vector<16x32xf32> to vector<16xf32>
    %5 = vector.shape_cast %4 : vector<16xf32> to vector<16x1xf32>
    %cst_6 = arith.constant 3.200000e+01 : f32
    %6 = vector.broadcast %cst_6 : f32 to vector<16x1xf32>
    %7 = arith.divf %5, %6 : vector<16x1xf32>
    %8 = vector.broadcast %7 : vector<16x1xf32> to vector<16x32xf32>
    %9 = arith.subf %1, %8 : vector<16x32xf32>
    %10 = arith.mulf %9, %9 : vector<16x32xf32>
    %cst_7 = arith.constant dense<0.000000e+00> : vector<16xf32>
    %11 = vector.multi_reduction <add>, %10, %cst_7 [1] : vector<16x32xf32> to vector<16xf32>
    %12 = vector.shape_cast %11 : vector<16xf32> to vector<16x1xf32>
    %cst_8 = arith.constant 0.0322580636 : f32
    %13 = vector.broadcast %cst_8 : f32 to vector<16x1xf32>
    %14 = arith.mulf %12, %13 : vector<16x1xf32>
    %15 = math.sqrt %14 : vector<16x1xf32>
    %cst_9 = arith.constant 9.99999997E-7 : f32
    %16 = vector.broadcast %cst_9 : f32 to vector<16x1xf32>
    %17 = arith.addf %15, %16 : vector<16x1xf32>
    %18 = tpu.reciprocal %17 {approx = true} : vector<16x1xf32> -> vector<16x1xf32>
    %19 = vector.broadcast %18 : vector<16x1xf32> to vector<16x32xf32>
    %20 = arith.mulf %9, %19 : vector<16x32xf32>
    %21 = vector.broadcast %2 : vector<1x32xf32> to vector<16x32xf32>
    %22 = arith.mulf %21, %20 : vector<16x32xf32>
    %23 = vector.broadcast %3 : vector<1x32xf32> to vector<16x32xf32>
    %24 = arith.addf %22, %23 : vector<16x32xf32>
    %25 = arith.truncf %24 : vector<16x32xf32> to vector<16x32xbf16>
    %c0_10 = arith.constant 0 : index
    %c0_11 = arith.constant 0 : index
    %26 = vector.load %arg2[%c0_10, %c0_11] : memref<32x32xbf16, #tpu.memory_space<vmem>>, vector<32x32xbf16>
    %cst_12 = arith.constant dense<0.000000e+00> : vector<16x32xf32>
    %27 = tpu.matmul %25, %26, %cst_12 {dimension_numbers = #tpu.dot_dimension_numbers<[1], [0], [0], [1], [0, 0, 1, 1], [], []>} : vector<16x32xbf16>, vector<32x32xbf16>, vector<16x32xf32> -> vector<16x32xf32>
    %c0_13 = arith.constant 0 : index
    %c0_14 = arith.constant 0 : index
    %28 = vector.load %arg3[%c0_13, %c0_14] : memref<1x32xf32, #tpu.memory_space<vmem>>, vector<1x32xf32>
    %29 = vector.broadcast %28 : vector<1x32xf32> to vector<16x32xf32>
    %30 = arith.addf %27, %29 : vector<16x32xf32>
    %c0_15 = arith.constant 0 : index
    %c0_16 = arith.constant 0 : index
    %31 = vector.load %arg4[%c0_15, %c0_16] : memref<32x32xbf16, #tpu.memory_space<vmem>>, vector<32x32xbf16>
    %cst_17 = arith.constant dense<0.000000e+00> : vector<16x32xf32>
    %32 = tpu.matmul %25, %31, %cst_17 {dimension_numbers = #tpu.dot_dimension_numbers<[1], [0], [0], [1], [0, 0, 1, 1], [], []>} : vector<16x32xbf16>, vector<32x32xbf16>, vector<16x32xf32> -> vector<16x32xf32>
    %c0_18 = arith.constant 0 : index
    %c0_19 = arith.constant 0 : index
    %33 = vector.load %arg5[%c0_18, %c0_19] : memref<1x32xf32, #tpu.memory_space<vmem>>, vector<1x32xf32>
    %34 = vector.broadcast %33 : vector<1x32xf32> to vector<16x32xf32>
    %35 = arith.addf %32, %34 : vector<16x32xf32>
    %c0_20 = arith.constant 0 : index
    %c0_21 = arith.constant 0 : index
    %36 = vector.load %arg6[%c0_20, %c0_21] : memref<32x32xbf16, #tpu.memory_space<vmem>>, vector<32x32xbf16>
    %cst_22 = arith.constant dense<0.000000e+00> : vector<16x32xf32>
    %37 = tpu.matmul %25, %36, %cst_22 {dimension_numbers = #tpu.dot_dimension_numbers<[1], [0], [0], [1], [0, 0, 1, 1], [], []>} : vector<16x32xbf16>, vector<32x32xbf16>, vector<16x32xf32> -> vector<16x32xf32>
    %c0_23 = arith.constant 0 : index
    %c0_24 = arith.constant 0 : index
    %38 = vector.load %arg7[%c0_23, %c0_24] : memref<1x32xf32, #tpu.memory_space<vmem>>, vector<1x32xf32>
    %39 = vector.broadcast %38 : vector<1x32xf32> to vector<16x32xf32>
    %40 = arith.addf %37, %39 : vector<16x32xf32>
    %cst_25 = arith.constant 0.353553385 : f32
    %41 = vector.broadcast %cst_25 : f32 to vector<16x32xf32>
    %42 = arith.mulf %30, %41 : vector<16x32xf32>
    %43 = vector.shape_cast %42 : vector<16x32xf32> to vector<2x8x32xf32>
    %44 = vector.shape_cast %35 : vector<16x32xf32> to vector<2x8x32xf32>
    %45 = vector.shape_cast %40 : vector<16x32xf32> to vector<2x8x32xf32>
    %46 = vector.extract_strided_slice %43 {offsets = [0, 0, 0], sizes = [2, 8, 8], strides = [1, 1, 1]} : vector<2x8x32xf32> to vector<2x8x8xf32>
    %47 = arith.truncf %46 : vector<2x8x8xf32> to vector<2x8x8xbf16>
    %48 = vector.extract_strided_slice %44 {offsets = [0, 0, 0], sizes = [2, 8, 8], strides = [1, 1, 1]} : vector<2x8x32xf32> to vector<2x8x8xf32>
    %49 = arith.truncf %48 : vector<2x8x8xf32> to vector<2x8x8xbf16>
    %50 = vector.extract_strided_slice %45 {offsets = [0, 0, 0], sizes = [2, 8, 8], strides = [1, 1, 1]} : vector<2x8x32xf32> to vector<2x8x8xf32>
    %51 = arith.truncf %50 : vector<2x8x8xf32> to vector<2x8x8xbf16>
    "tpu.trace_start"() <{level = 10 : i32, message = "bqd,bkd->bqk"}> : () -> ()
    %cst_26 = arith.constant dense<0.000000e+00> : vector<2x8x8xf32>
    %52 = tpu.matmul %47, %49, %cst_26 {dimension_numbers = #tpu.dot_dimension_numbers<[2], [2], [1], [1], [0, 0, 0, 1, 1, 1], [0], [0]>} : vector<2x8x8xbf16>, vector<2x8x8xbf16>, vector<2x8x8xf32> -> vector<2x8x8xf32>
    "tpu.trace_stop"() : () -> ()
    %cst_27 = arith.constant dense<0xFF800000> : vector<2x8xf32>
    %53 = vector.multi_reduction <maximumf>, %52, %cst_27 [2] : vector<2x8x8xf32> to vector<2x8xf32>
    %54 = vector.shape_cast %53 : vector<2x8xf32> to vector<2x8x1xf32>
    %55 = vector.broadcast %54 : vector<2x8x1xf32> to vector<2x8x8xf32>
    %56 = arith.subf %52, %55 : vector<2x8x8xf32>
    %57 = math.exp %56 : vector<2x8x8xf32>
    %cst_28 = arith.constant dense<0.000000e+00> : vector<2x8xf32>
    %58 = vector.multi_reduction <add>, %57, %cst_28 [2] : vector<2x8x8xf32> to vector<2x8xf32>
    %59 = vector.shape_cast %58 : vector<2x8xf32> to vector<2x8x1xf32>
    %60 = tpu.reciprocal %59 {approx = true} : vector<2x8x1xf32> -> vector<2x8x1xf32>
    %61 = vector.broadcast %60 : vector<2x8x1xf32> to vector<2x8x8xf32>
    %62 = arith.mulf %57, %61 : vector<2x8x8xf32>
    %63 = arith.truncf %62 : vector<2x8x8xf32> to vector<2x8x8xbf16>
    "tpu.trace_start"() <{level = 10 : i32, message = "bqk,bkd->bqd"}> : () -> ()
    %cst_29 = arith.constant dense<0.000000e+00> : vector<2x8x8xf32>
    %64 = tpu.matmul %63, %51, %cst_29 {dimension_numbers = #tpu.dot_dimension_numbers<[2], [1], [1], [2], [0, 0, 0, 1, 1, 2], [0], [0]>} : vector<2x8x8xbf16>, vector<2x8x8xbf16>, vector<2x8x8xf32> -> vector<2x8x8xf32>
    "tpu.trace_stop"() : () -> ()
    %65 = vector.extract_strided_slice %43 {offsets = [0, 0, 8], sizes = [2, 8, 8], strides = [1, 1, 1]} : vector<2x8x32xf32> to vector<2x8x8xf32>
    %66 = arith.truncf %65 : vector<2x8x8xf32> to vector<2x8x8xbf16>
    %67 = vector.extract_strided_slice %44 {offsets = [0, 0, 8], sizes = [2, 8, 8], strides = [1, 1, 1]} : vector<2x8x32xf32> to vector<2x8x8xf32>
    %68 = arith.truncf %67 : vector<2x8x8xf32> to vector<2x8x8xbf16>
    %69 = vector.extract_strided_slice %45 {offsets = [0, 0, 8], sizes = [2, 8, 8], strides = [1, 1, 1]} : vector<2x8x32xf32> to vector<2x8x8xf32>
    %70 = arith.truncf %69 : vector<2x8x8xf32> to vector<2x8x8xbf16>
    "tpu.trace_start"() <{level = 10 : i32, message = "bqd,bkd->bqk"}> : () -> ()
    %cst_30 = arith.constant dense<0.000000e+00> : vector<2x8x8xf32>
    %71 = tpu.matmul %66, %68, %cst_30 {dimension_numbers = #tpu.dot_dimension_numbers<[2], [2], [1], [1], [0, 0, 0, 1, 1, 1], [0], [0]>} : vector<2x8x8xbf16>, vector<2x8x8xbf16>, vector<2x8x8xf32> -> vector<2x8x8xf32>
    "tpu.trace_stop"() : () -> ()
    %cst_31 = arith.constant dense<0xFF800000> : vector<2x8xf32>
    %72 = vector.multi_reduction <maximumf>, %71, %cst_31 [2] : vector<2x8x8xf32> to vector<2x8xf32>
    %73 = vector.shape_cast %72 : vector<2x8xf32> to vector<2x8x1xf32>
    %74 = vector.broadcast %73 : vector<2x8x1xf32> to vector<2x8x8xf32>
    %75 = arith.subf %71, %74 : vector<2x8x8xf32>
    %76 = math.exp %75 : vector<2x8x8xf32>
    %cst_32 = arith.constant dense<0.000000e+00> : vector<2x8xf32>
    %77 = vector.multi_reduction <add>, %76, %cst_32 [2] : vector<2x8x8xf32> to vector<2x8xf32>
    %78 = vector.shape_cast %77 : vector<2x8xf32> to vector<2x8x1xf32>
    %79 = tpu.reciprocal %78 {approx = true} : vector<2x8x1xf32> -> vector<2x8x1xf32>
    %80 = vector.broadcast %79 : vector<2x8x1xf32> to vector<2x8x8xf32>
    %81 = arith.mulf %76, %80 : vector<2x8x8xf32>
    %82 = arith.truncf %81 : vector<2x8x8xf32> to vector<2x8x8xbf16>
    "tpu.trace_start"() <{level = 10 : i32, message = "bqk,bkd->bqd"}> : () -> ()
    %cst_33 = arith.constant dense<0.000000e+00> : vector<2x8x8xf32>
    %83 = tpu.matmul %82, %70, %cst_33 {dimension_numbers = #tpu.dot_dimension_numbers<[2], [1], [1], [2], [0, 0, 0, 1, 1, 2], [0], [0]>} : vector<2x8x8xbf16>, vector<2x8x8xbf16>, vector<2x8x8xf32> -> vector<2x8x8xf32>
    "tpu.trace_stop"() : () -> ()
    %84 = vector.extract_strided_slice %43 {offsets = [0, 0, 16], sizes = [2, 8, 8], strides = [1, 1, 1]} : vector<2x8x32xf32> to vector<2x8x8xf32>
    %85 = arith.truncf %84 : vector<2x8x8xf32> to vector<2x8x8xbf16>
    %86 = vector.extract_strided_slice %44 {offsets = [0, 0, 16], sizes = [2, 8, 8], strides = [1, 1, 1]} : vector<2x8x32xf32> to vector<2x8x8xf32>
    %87 = arith.truncf %86 : vector<2x8x8xf32> to vector<2x8x8xbf16>
    %88 = vector.extract_strided_slice %45 {offsets = [0, 0, 16], sizes = [2, 8, 8], strides = [1, 1, 1]} : vector<2x8x32xf32> to vector<2x8x8xf32>
    %89 = arith.truncf %88 : vector<2x8x8xf32> to vector<2x8x8xbf16>
    "tpu.trace_start"() <{level = 10 : i32, message = "bqd,bkd->bqk"}> : () -> ()
    %cst_34 = arith.constant dense<0.000000e+00> : vector<2x8x8xf32>
    %90 = tpu.matmul %85, %87, %cst_34 {dimension_numbers = #tpu.dot_dimension_numbers<[2], [2], [1], [1], [0, 0, 0, 1, 1, 1], [0], [0]>} : vector<2x8x8xbf16>, vector<2x8x8xbf16>, vector<2x8x8xf32> -> vector<2x8x8xf32>
    "tpu.trace_stop"() : () -> ()
    %cst_35 = arith.constant dense<0xFF800000> : vector<2x8xf32>
    %91 = vector.multi_reduction <maximumf>, %90, %cst_35 [2] : vector<2x8x8xf32> to vector<2x8xf32>
    %92 = vector.shape_cast %91 : vector<2x8xf32> to vector<2x8x1xf32>
    %93 = vector.broadcast %92 : vector<2x8x1xf32> to vector<2x8x8xf32>
    %94 = arith.subf %90, %93 : vector<2x8x8xf32>
    %95 = math.exp %94 : vector<2x8x8xf32>
    %cst_36 = arith.constant dense<0.000000e+00> : vector<2x8xf32>
    %96 = vector.multi_reduction <add>, %95, %cst_36 [2] : vector<2x8x8xf32> to vector<2x8xf32>
    %97 = vector.shape_cast %96 : vector<2x8xf32> to vector<2x8x1xf32>
    %98 = tpu.reciprocal %97 {approx = true} : vector<2x8x1xf32> -> vector<2x8x1xf32>
    %99 = vector.broadcast %98 : vector<2x8x1xf32> to vector<2x8x8xf32>
    %100 = arith.mulf %95, %99 : vector<2x8x8xf32>
    %101 = arith.truncf %100 : vector<2x8x8xf32> to vector<2x8x8xbf16>
    "tpu.trace_start"() <{level = 10 : i32, message = "bqk,bkd->bqd"}> : () -> ()
    %cst_37 = arith.constant dense<0.000000e+00> : vector<2x8x8xf32>
    %102 = tpu.matmul %101, %89, %cst_37 {dimension_numbers = #tpu.dot_dimension_numbers<[2], [1], [1], [2], [0, 0, 0, 1, 1, 2], [0], [0]>} : vector<2x8x8xbf16>, vector<2x8x8xbf16>, vector<2x8x8xf32> -> vector<2x8x8xf32>
    "tpu.trace_stop"() : () -> ()
    %103 = vector.extract_strided_slice %43 {offsets = [0, 0, 24], sizes = [2, 8, 8], strides = [1, 1, 1]} : vector<2x8x32xf32> to vector<2x8x8xf32>
    %104 = arith.truncf %103 : vector<2x8x8xf32> to vector<2x8x8xbf16>
    %105 = vector.extract_strided_slice %44 {offsets = [0, 0, 24], sizes = [2, 8, 8], strides = [1, 1, 1]} : vector<2x8x32xf32> to vector<2x8x8xf32>
    %106 = arith.truncf %105 : vector<2x8x8xf32> to vector<2x8x8xbf16>
    %107 = vector.extract_strided_slice %45 {offsets = [0, 0, 24], sizes = [2, 8, 8], strides = [1, 1, 1]} : vector<2x8x32xf32> to vector<2x8x8xf32>
    %108 = arith.truncf %107 : vector<2x8x8xf32> to vector<2x8x8xbf16>
    "tpu.trace_start"() <{level = 10 : i32, message = "bqd,bkd->bqk"}> : () -> ()
    %cst_38 = arith.constant dense<0.000000e+00> : vector<2x8x8xf32>
    %109 = tpu.matmul %104, %106, %cst_38 {dimension_numbers = #tpu.dot_dimension_numbers<[2], [2], [1], [1], [0, 0, 0, 1, 1, 1], [0], [0]>} : vector<2x8x8xbf16>, vector<2x8x8xbf16>, vector<2x8x8xf32> -> vector<2x8x8xf32>
    "tpu.trace_stop"() : () -> ()
    %cst_39 = arith.constant dense<0xFF800000> : vector<2x8xf32>
    %110 = vector.multi_reduction <maximumf>, %109, %cst_39 [2] : vector<2x8x8xf32> to vector<2x8xf32>
    %111 = vector.shape_cast %110 : vector<2x8xf32> to vector<2x8x1xf32>
    %112 = vector.broadcast %111 : vector<2x8x1xf32> to vector<2x8x8xf32>
    %113 = arith.subf %109, %112 : vector<2x8x8xf32>
    %114 = math.exp %113 : vector<2x8x8xf32>
    %cst_40 = arith.constant dense<0.000000e+00> : vector<2x8xf32>
    %115 = vector.multi_reduction <add>, %114, %cst_40 [2] : vector<2x8x8xf32> to vector<2x8xf32>
    %116 = vector.shape_cast %115 : vector<2x8xf32> to vector<2x8x1xf32>
    %117 = tpu.reciprocal %116 {approx = true} : vector<2x8x1xf32> -> vector<2x8x1xf32>
    %118 = vector.broadcast %117 : vector<2x8x1xf32> to vector<2x8x8xf32>
    %119 = arith.mulf %114, %118 : vector<2x8x8xf32>
    %120 = arith.truncf %119 : vector<2x8x8xf32> to vector<2x8x8xbf16>
    "tpu.trace_start"() <{level = 10 : i32, message = "bqk,bkd->bqd"}> : () -> ()
    %cst_41 = arith.constant dense<0.000000e+00> : vector<2x8x8xf32>
    %121 = tpu.matmul %120, %108, %cst_41 {dimension_numbers = #tpu.dot_dimension_numbers<[2], [1], [1], [2], [0, 0, 0, 1, 1, 2], [0], [0]>} : vector<2x8x8xbf16>, vector<2x8x8xbf16>, vector<2x8x8xf32> -> vector<2x8x8xf32>
    "tpu.trace_stop"() : () -> ()
    %122 = tpu.concatenate %64, %83, %102, %121 in 2 : vector<2x8x8xf32>, vector<2x8x8xf32>, vector<2x8x8xf32>, vector<2x8x8xf32> -> vector<2x8x32xf32>
    %123 = vector.shape_cast %122 : vector<2x8x32xf32> to vector<16x32xf32>
    %124 = arith.truncf %123 : vector<16x32xf32> to vector<16x32xbf16>
    %c0_42 = arith.constant 0 : index
    %c0_43 = arith.constant 0 : index
    %125 = vector.load %arg8[%c0_42, %c0_43] : memref<32x32xbf16, #tpu.memory_space<vmem>>, vector<32x32xbf16>
    %cst_44 = arith.constant dense<0.000000e+00> : vector<16x32xf32>
    %126 = tpu.matmul %124, %125, %cst_44 {dimension_numbers = #tpu.dot_dimension_numbers<[1], [0], [0], [1], [0, 0, 1, 1], [], []>} : vector<16x32xbf16>, vector<32x32xbf16>, vector<16x32xf32> -> vector<16x32xf32>
    %c0_45 = arith.constant 0 : index
    %c0_46 = arith.constant 0 : index
    %127 = vector.load %arg9[%c0_45, %c0_46] : memref<1x32xf32, #tpu.memory_space<vmem>>, vector<1x32xf32>
    %128 = vector.broadcast %127 : vector<1x32xf32> to vector<16x32xf32>
    %129 = arith.addf %126, %128 : vector<16x32xf32>
    %130 = arith.addf %1, %129 : vector<16x32xf32>
    %cst_47 = arith.constant dense<0.000000e+00> : vector<16xf32>
    %131 = vector.multi_reduction <add>, %130, %cst_47 [1] : vector<16x32xf32> to vector<16xf32>
    %132 = vector.shape_cast %131 : vector<16xf32> to vector<16x1xf32>
    %cst_48 = arith.constant 3.200000e+01 : f32
    %133 = vector.broadcast %cst_48 : f32 to vector<16x1xf32>
    %134 = arith.divf %132, %133 : vector<16x1xf32>
    %135 = vector.broadcast %134 : vector<16x1xf32> to vector<16x32xf32>
    %136 = arith.subf %130, %135 : vector<16x32xf32>
    %137 = arith.mulf %136, %136 : vector<16x32xf32>
    %cst_49 = arith.constant dense<0.000000e+00> : vector<16xf32>
    %138 = vector.multi_reduction <add>, %137, %cst_49 [1] : vector<16x32xf32> to vector<16xf32>
    %139 = vector.shape_cast %138 : vector<16xf32> to vector<16x1xf32>
    %cst_50 = arith.constant 0.0322580636 : f32
    %140 = vector.broadcast %cst_50 : f32 to vector<16x1xf32>
    %141 = arith.mulf %139, %140 : vector<16x1xf32>
    %142 = math.sqrt %141 : vector<16x1xf32>
    %cst_51 = arith.constant 9.99999997E-7 : f32
    %143 = vector.broadcast %cst_51 : f32 to vector<16x1xf32>
    %144 = arith.addf %142, %143 : vector<16x1xf32>
    %145 = tpu.reciprocal %144 {approx = true} : vector<16x1xf32> -> vector<16x1xf32>
    %146 = vector.broadcast %145 : vector<16x1xf32> to vector<16x32xf32>
    %147 = arith.mulf %136, %146 : vector<16x32xf32>
    %148 = vector.broadcast %2 : vector<1x32xf32> to vector<16x32xf32>
    %149 = arith.mulf %148, %147 : vector<16x32xf32>
    %150 = vector.broadcast %3 : vector<1x32xf32> to vector<16x32xf32>
    %151 = arith.addf %149, %150 : vector<16x32xf32>
    %152 = arith.truncf %151 : vector<16x32xf32> to vector<16x32xbf16>
    %c0_52 = arith.constant 0 : index
    %c0_53 = arith.constant 0 : index
    %153 = vector.load %arg12[%c0_52, %c0_53] : memref<32x64xbf16, #tpu.memory_space<vmem>>, vector<32x64xbf16>
    %cst_54 = arith.constant dense<0.000000e+00> : vector<16x64xf32>
    %154 = tpu.matmul %152, %153, %cst_54 {dimension_numbers = #tpu.dot_dimension_numbers<[1], [0], [0], [1], [0, 0, 1, 1], [], []>} : vector<16x32xbf16>, vector<32x64xbf16>, vector<16x64xf32> -> vector<16x64xf32>
    %c0_55 = arith.constant 0 : index
    %c0_56 = arith.constant 0 : index
    %155 = vector.load %arg13[%c0_55, %c0_56] : memref<1x64xf32, #tpu.memory_space<vmem>>, vector<1x64xf32>
    %156 = vector.broadcast %155 : vector<1x64xf32> to vector<16x64xf32>
    %157 = arith.addf %154, %156 : vector<16x64xf32>
    %cst_57 = arith.constant 0.000000e+00 : f32
    %158 = vector.broadcast %cst_57 : f32 to vector<16x64xf32>
    %159 = arith.maximumf %157, %158 : vector<16x64xf32>
    %160 = arith.truncf %159 : vector<16x64xf32> to vector<16x64xbf16>
    %c0_58 = arith.constant 0 : index
    %c0_59 = arith.constant 0 : index
    %161 = vector.load %arg14[%c0_58, %c0_59] : memref<64x32xbf16, #tpu.memory_space<vmem>>, vector<64x32xbf16>
    %cst_60 = arith.constant dense<0.000000e+00> : vector<16x32xf32>
    %162 = tpu.matmul %160, %161, %cst_60 {dimension_numbers = #tpu.dot_dimension_numbers<[1], [0], [0], [1], [0, 0, 1, 1], [], []>} : vector<16x64xbf16>, vector<64x32xbf16>, vector<16x32xf32> -> vector<16x32xf32>
    %c0_61 = arith.constant 0 : index
    %c0_62 = arith.constant 0 : index
    %163 = vector.load %arg15[%c0_61, %c0_62] : memref<1x32xf32, #tpu.memory_space<vmem>>, vector<1x32xf32>
    %164 = vector.broadcast %163 : vector<1x32xf32> to vector<16x32xf32>
    %165 = arith.addf %162, %164 : vector<16x32xf32>
    %166 = arith.addf %130, %165 : vector<16x32xf32>
    %167 = vector.shape_cast %166 : vector<16x32xf32> to vector<2x8x32xf32>
    %c0_63 = arith.constant 0 : index
    %c0_64 = arith.constant 0 : index
    %c0_65 = arith.constant 0 : index
    %168 = vector.load %arg16[%c0_63, %c0_64, %c0_65] : memref<2x8x32xf32, #tpu.memory_space<vmem>>, vector<2x8x32xf32>
    tpu.vector_store %arg16[%c0_63, %c0_64, %c0_65], %167 {strides = array<i32>} : memref<2x8x32xf32, #tpu.memory_space<vmem>>, vector<2x8x32xf32>,
    return
  }
  func.func @transform_0(%arg0: i32) -> (i32, i32, i32) {
    %c0_i32 = arith.constant 0 : i32
    %c0_i32_0 = arith.constant 0 : i32
    %c0_i32_1 = arith.constant 0 : i32
    return %arg0, %c0_i32, %c0_i32_0 : i32, i32, i32
  }
  func.func @transform_1(%arg0: i32) -> (i32, i32) {
    %c0_i32 = arith.constant 0 : i32
    %c0_i32_0 = arith.constant 0 : i32
    %c0_i32_1 = arith.constant 0 : i32
    return %c0_i32, %c0_i32_0 : i32, i32
  }
  func.func @transform_2(%arg0: i32) -> (i32, i32) {
    %c0_i32 = arith.constant 0 : i32
    %c0_i32_0 = arith.constant 0 : i32
    %c0_i32_1 = arith.constant 0 : i32
    return %c0_i32, %c0_i32_0 : i32, i32
  }
  func.func @transform_3(%arg0: i32) -> (i32, i32) {
    %c0_i32 = arith.constant 0 : i32
    %c0_i32_0 = arith.constant 0 : i32
    %c0_i32_1 = arith.constant 0 : i32
    return %c0_i32, %c0_i32_0 : i32, i32
  }
  func.func @transform_4(%arg0: i32) -> (i32, i32) {
    %c0_i32 = arith.constant 0 : i32
    %c0_i32_0 = arith.constant 0 : i32
    %c0_i32_1 = arith.constant 0 : i32
    return %c0_i32, %c0_i32_0 : i32, i32
  }
  func.func @transform_5(%arg0: i32) -> (i32, i32) {
    %c0_i32 = arith.constant 0 : i32
    %c0_i32_0 = arith.constant 0 : i32
    %c0_i32_1 = arith.constant 0 : i32
    return %c0_i32, %c0_i32_0 : i32, i32
  }
  func.func @transform_6(%arg0: i32) -> (i32, i32) {
    %c0_i32 = arith.constant 0 : i32
    %c0_i32_0 = arith.constant 0 : i32
    %c0_i32_1 = arith.constant 0 : i32
    return %c0_i32, %c0_i32_0 : i32, i32
  }
  func.func @transform_7(%arg0: i32) -> (i32, i32) {
    %c0_i32 = arith.constant 0 : i32
    %c0_i32_0 = arith.constant 0 : i32
    %c0_i32_1 = arith.constant 0 : i32
    return %c0_i32, %c0_i32_0 : i32, i32
  }
  func.func @transform_8(%arg0: i32) -> (i32, i32) {
    %c0_i32 = arith.constant 0 : i32
    %c0_i32_0 = arith.constant 0 : i32
    %c0_i32_1 = arith.constant 0 : i32
    return %c0_i32, %c0_i32_0 : i32, i32
  }
  func.func @transform_9(%arg0: i32) -> (i32, i32) {
    %c0_i32 = arith.constant 0 : i32
    %c0_i32_0 = arith.constant 0 : i32
    %c0_i32_1 = arith.constant 0 : i32
    return %c0_i32, %c0_i32_0 : i32, i32
  }
  func.func @transform_10(%arg0: i32) -> (i32, i32) {
    %c0_i32 = arith.constant 0 : i32
    %c0_i32_0 = arith.constant 0 : i32
    %c0_i32_1 = arith.constant 0 : i32
    return %c0_i32, %c0_i32_0 : i32, i32
  }
  func.func @transform_11(%arg0: i32) -> (i32, i32) {
    %c0_i32 = arith.constant 0 : i32
    %c0_i32_0 = arith.constant 0 : i32
    %c0_i32_1 = arith.constant 0 : i32
    return %c0_i32, %c0_i32_0 : i32, i32
  }
  func.func @transform_12(%arg0: i32) -> (i32, i32) {
    %c0_i32 = arith.constant 0 : i32
    %c0_i32_0 = arith.constant 0 : i32
    %c0_i32_1 = arith.constant 0 : i32
    return %c0_i32, %c0_i32_0 : i32, i32
  }
  func.func @transform_13(%arg0: i32) -> (i32, i32) {
    %c0_i32 = arith.constant 0 : i32
    %c0_i32_0 = arith.constant 0 : i32
    %c0_i32_1 = arith.constant 0 : i32
    return %c0_i32, %c0_i32_0 : i32, i32
  }
  func.func @transform_14(%arg0: i32) -> (i32, i32) {
    %c0_i32 = arith.constant 0 : i32
    %c0_i32_0 = arith.constant 0 : i32
    %c0_i32_1 = arith.constant 0 : i32
    return %c0_i32, %c0_i32_0 : i32, i32
  }
  func.func @transform_15(%arg0: i32) -> (i32, i32, i32) {
    %c0_i32 = arith.constant 0 : i32
    %c0_i32_0 = arith.constant 0 : i32
    %c0_i32_1 = arith.constant 0 : i32
    return %arg0, %c0_i32, %c0_i32_0 : i32, i32, i32
  }
}

</mosaic_0001>

<bundles_post_ra>
// kernel: tpu_custom_call.1
= control target key start
LH: loop header
LB: loop body
LE: loop exit
PB: predicated region body
PF: predicated region fallthrough
CT: control target
= control target key end

     0   :  { %20 = vsyncpa [#allocation3], 0  ;;  %s2383_s0 = inlined_call_operand.vmem [shape: f32[2,8,32], index: 0, kind: input, shape index: {}]   ;;  %s2384_s1 = inlined_call_operand.vmem [shape: bf16[32,32], index: 1, kind: input, shape index: {}]   ;;  %s2385_s2 = inlined_call_operand.vmem [shape: f32[1,32], index: 2, kind: input, shape index: {}]   ;;  %s2386_s3 = inlined_call_operand.vmem [shape: bf16[32,32], index: 3, kind: input, shape index: {}]   ;;  %s2387_s4 = inlined_call_operand.vmem [shape: f32[1,32], index: 4, kind: input, shape index: {}]   ;;  %s2388_s5 = inlined_call_operand.hbm [shape: bf16[32,32], index: 5, kind: input, shape index: {}]   ;;  %s2389_s6 = inlined_call_operand.vmem [shape: f32[1,32], index: 6, kind: input, shape index: {}]   ;;  %s2390_s7 = inlined_call_operand.hbm [shape: bf16[32,32], index: 7, kind: input, shape index: {}]   ;;  %s2391_s8 = inlined_call_operand.vmem [shape: f32[1,32], index: 8, kind: input, shape index: {}]   ;;  %s2392_s9 = inlined_call_operand.vmem [shape: f32[1,32], index: 9, kind: input, shape index: {}]   ;;  %s2393_s10 = inlined_call_operand.vmem [shape: f32[1,32], index: 10, kind: input, shape index: {}]   ;;  %s2394_s11 = inlined_call_operand.hbm [shape: bf16[32,64], index: 11, kind: input, shape index: {}]   ;;  %s2395_s12 = inlined_call_operand.vmem [shape: f32[1,64], index: 12, kind: input, shape index: {}]   ;;  %s2396_s13 = inlined_call_operand.vmem [shape: bf16[64,32], index: 13, kind: input, shape index: {}]   ;;  %s2397_s14 = inlined_call_operand.vmem [shape: f32[1,32], index: 14, kind: input, shape index: {}]   ;;  %s2398_s15 = inlined_call_operand.hbm [shape: f32[2,8,32], index: 15, kind: output, shape index: {}]  }
   0x1   :  { %21 = vsyncpa [#allocation6], 0 }
   0x2   :  { %22 = vsyncpa [#allocation4], 0  ;;  %s1980_s18 = smov [#allocation5]   ;;  %s1981_s20 = smov [#allocation2]  }
   0x3   :  { %s52_s19 = sshll.u32 %s1980_s18, 4  ;;  %s38_s21 = sshll.u32 %s1981_s20, 4  ;;  %s53_s19 = int_to_ptr.vmem [resolvable:$true] %s52_s19  ;;  %s39_s21 = int_to_ptr.vmem [resolvable:$true] %s38_s21 }
   0x4   :  { %s1902_s22 = scalar_lea.vmem %s53_s19, 256  ;;  %p1907_p1 = scmp.lt.s32.totalorder %s53_s19, %s53_s19 }
   0x5   :  { %p1903_p0 = scmp.ne.s32.totalorder %s53_s19, %s1902_s22  ;;  %p1908_p2 = scmp.lt.s32.totalorder %s1902_s22, %s1902_s22 }
   0x7   :  { %p1909_p3 = por %p1908_p2, %p1907_p1 }
   0x9   :  { %p1910_p4 = pnand %p1909_p3, %p1903_p0 }
   0xb   :  { %1913 = shalt.err (!%p1910_p4)
}
   0xc   :  { %s1982_s23 = smov 64   ;;  %s1983_s24 = smov 4  }
   0xd   :  { %58 = dma.hbm_to_vmem [thread:$0]  %s2390_s7, 256, %s53_s19, [#allocation6], %s1982_s23, %s1982_s23, %s1983_s24  }
   0xe   :  { %s1922_s27 = scalar_lea.vmem %s39_s21, 256  ;;  %p1927_p6 = scmp.lt.s32.totalorder %s39_s21, %s39_s21 }
   0xf   :  { %p1923_p5 = scmp.ne.s32.totalorder %s39_s21, %s1922_s27  ;;  %p1928_p7 = scmp.lt.s32.totalorder %s1922_s27, %s1922_s27 }
  0x11   :  { %p1929_p8 = por %p1928_p7, %p1927_p6 }
  0x13   :  { %p1930_p9 = pnand %p1929_p8, %p1923_p5 }
  0x15   :  { %1933 = shalt.err (!%p1930_p9)
}
  0x16   :  { %44 = dma.hbm_to_vmem [thread:$0]  %s2388_s5, 256, %s39_s21, [#allocation3], %s1982_s23, %s1982_s23, %s1983_s24  }
  0x17   :  { %s1984_s30 = smov [#allocation7]  }
  0x18   :  { %s70_s16 = sshll.u32 %s1984_s30, 4  ;;  %s71_s16 = int_to_ptr.vmem [resolvable:$true] %s70_s16 }
  0x19   :  { %s1942_s17 = scalar_lea.vmem %s71_s16, 256  ;;  %p1947_p11 = scmp.lt.s32.totalorder %s71_s16, %s71_s16 }
  0x1a   :  { %p1943_p10 = scmp.ne.s32.totalorder %s71_s16, %s1942_s17  ;;  %p1948_p12 = scmp.lt.s32.totalorder %s1942_s17, %s1942_s17 }
  0x1c   :  { %p1949_p13 = por %p1948_p12, %p1947_p11 }
  0x1e   :  { %p1950_p0 = pnand %p1949_p13, %p1943_p10 }
  0x20   :  { %1953 = shalt.err (!%p1950_p0)
}
  0x21   :  { %76 = dma.hbm_to_vmem [thread:$0]  %s2394_s11, 256, %s71_s16, [#allocation6], %s1982_s23, %s1982_s23, %s1983_s24  }
  0x22   :  { %1974 = dma.done.wait [#allocation3], 256  }
  0x23   :  { %1975 = vsyncadd [#allocation3], 4294967040 }
  0x24   :  { %1976 = dma.done.wait [#allocation6], 512  }
  0x25   :  { %1977 = vsyncadd [#allocation6], 4294966784  ;;  %vm97_vm0 = vcmask 261120   ;;  %v2087_v0 = vld [vmem:[%s2383_s0] sm:$0xff]  ;;  %v2092_v1 = vld [vmem:[%s2383_s0 + $0x8] sm:$0xff]  ;;  %v1985_v16 = vmov 0.0  }
  0x26   :  { %v98_v2 = vsel %vm97_vm0, %v2087_v0, 0.0  ;;  %v101_v3 = vsel %vm97_vm0, %v2092_v1, 0.0  ;;  %v1832_v14 = vld [vmem:[%s2384_s1 + $0x8] sm:$0xff]   ;;  %1654 = vmatprep.subr.bf16.mxu0 %v1985_v16  ;;  %1662 = vmatprep.subr.bf16.mxu1 %v1985_v16  ;;  %v1834_v17 = vld [vmem:[%s2384_s1] sm:$0xff]   ;;  %vm1986_vm1 = vmmov 0   ;;  %vm359_vm6 = vcmask 64512  }
  0x27   :  { %99 = vadd.xlane.f32.xlu0 %v98_v2  ;;  %v1833_v15 = vld [vmem:[%s2386_s3 + $0x8] sm:$0xff]   ;;  %1655 = vmatpush3.bf16.msra.mxu0 %v1832_v14  ;;  %v1835_v18 = vld [vmem:[%s2386_s3] sm:$0xff]   ;;  %vm479_vm7 = vcmask 1043456   ;;  %s1988_s17 = smov 112   ;;  %s1989_s7 = smov 104   ;;  %vm1261_vm8 = vcmask 130048  }
  0x28   :  { %1663 = vmatpush3.bf16.msra.mxu1 %v1833_v15  ;;  %1656 = vmatprep.subr.bf16.mxu0 %v1985_v16  ;;  %v2127_v37 = vld [vmem:[%s2392_s9] ss:$0 sm:$0xff]  ;;  %v1836_v45 = vld [vmem:[#allocation2 + $0x8] sm:$0xff]   ;;  %s1990_s18 = smov 8   ;;  %s1991_s5 = smov 16   ;;  %vm1264_vm9 = vcmask 195584  }
  0x29   :  { %1664 = vmatprep.subr.bf16.mxu1 %v1985_v16  ;;  %1658 = vmatprep.mubr.msk.bf16.mxu0 %vm1986_vm1, %v1985_v16  ;;  %v2133_v41 = vld [vmem:[%s2393_s10] ss:$0 sm:$0xff]  ;;  %s1992_s19 = smov 24   ;;  %vm1491_vm14 = vcmask 523264  }
  0x2a   :  { %1666 = vmatprep.mubr.msk.bf16.mxu1 %vm1986_vm1, %v1985_v16  ;;  %v1837_v47 = vld [vmem:[#allocation2] sm:$0xff]  }
  0x2b   :  { %102 = vadd.xlane.f32.xlu0 %v101_v3  ;;  %1657 = vmatpush3.bf16.msra.mxu0 %v1834_v17  ;;  %v1564_v48 = vld [vmem:[%s2387_s4] ss:$0 sm:$0xff] }
  0x2c   :  { %1665 = vmatpush3.bf16.msra.mxu1 %v1835_v18  ;;  %1670 = vmatprep.subr.bf16.mxu0 %v1985_v16  ;;  %v1560_v49 = vld [vmem:[%s2385_s2] ss:$0 sm:$0xff] }
  0x2d   :  { %1678 = vmatprep.subr.bf16.mxu1 %v1985_v16  ;;  %v1568_v63 = vld [vmem:[%s2389_s6] ss:$0 sm:$0xff]  ;;  %s1987_s6 = smov 120  }
  0xb0   :  { %v100_v4 = vpop.xlane.xlu0 %99 }
  0xb1   :  { %v105_v5 = vmul.f32 0.03125, %v100_v4 }
  0xb3   :  { %v107_v6 = vsub.f32 %v2087_v0, %v105_v5 }
  0xb4   :  { %v103_v7 = vpop.xlane.xlu0 %102 }
  0xb5   :  { %v106_v8 = vmul.f32 0.03125, %v103_v7  ;;  %v109_v9 = vmul.f32 %v107_v6, %v107_v6 }
  0xb7   :  { %v108_v10 = vsub.f32 %v2092_v1, %v106_v8  ;;  %v111_v11 = vsel %vm97_vm0, %v109_v9, 0.0 }
  0xb8   :  { %112 = vadd.xlane.f32.xlu1 %v111_v11 }
  0xb9   :  { %v110_v12 = vmul.f32 %v108_v10, %v108_v10 }
  0xbb   :  { %v114_v13 = vsel %vm97_vm0, %v110_v12, 0.0 }
  0xbc   :  { %115 = vadd.xlane.f32.xlu1 %v114_v13 }
 0x141   :  { %v113_v19 = vpop.xlane.xlu1 %112 }
 0x142   :  { %v117_v20 = vmul.f32 0.032258064, %v113_v19 }
 0x144   :  { %1846 = vrsqrt.f32 %v117_v20  ;;  %vm121_vm2 = vcmp.eq.f32.partialorder %v117_v20, inf  ;;  %v124_v25 = vand.u32 2147483648, %v117_v20  ;;  %vm123_vm3 = vcmp.eq.f32.partialorder %v117_v20, 0.0 }
 0x145   :  { %v116_v21 = vpop.xlane.xlu1 %115 }
 0x146   :  { %v118_v22 = vmul.f32 0.032258064, %v116_v21 }
 0x148   :  { %1848 = vrsqrt.f32 %v118_v22  ;;  %vm128_vm4 = vcmp.eq.f32.partialorder %v118_v22, inf  ;;  %v131_v31 = vand.u32 2147483648, %v118_v22  ;;  %vm130_vm5 = vcmp.eq.f32.partialorder %v118_v22, 0.0 }
 0x151   :  { %v1847_v23 = vpop.eup %1846 }
 0x152   :  { %v120_v24 = vmul.f32 %v1847_v23, %v117_v20 }
 0x154   :  { %v122_v26 = vsel %vm121_vm2, %v117_v20, %v120_v24 }
 0x155   :  { %v1849_v27 = vpop.eup %1848  ;;  %v125_v28 = vsel %vm123_vm3, %v124_v25, %v122_v26 }
 0x156   :  { %v133_v29 = vadd.f32 1e-06, %v125_v28  ;;  %v127_v30 = vmul.f32 %v1849_v27, %v118_v22 }
 0x158   :  { %1850 = vrcp.f32 %v133_v29  ;;  %v129_v32 = vsel %vm128_vm4, %v118_v22, %v127_v30 }
 0x159   :  { %v132_v33 = vsel %vm130_vm5, %v131_v31, %v129_v32 }
 0x15a   :  { %v134_v34 = vadd.f32 1e-06, %v132_v33 }
 0x15c   :  { %1852 = vrcp.f32 %v134_v34 }
 0x165   :  { %v1851_v35 = vpop.eup %1850 }
 0x166   :  { %v137_v36 = vmul.f32 %v1851_v35, %v107_v6 }
 0x168   :  { %v145_v40 = vmul.f32 %v2127_v37, %v137_v36 }
 0x169   :  { %v1853_v38 = vpop.eup %1852 }
 0x16a   :  { %v138_v39 = vmul.f32 %v1853_v38, %v108_v10  ;;  %v153_v43 = vadd.f32 %v2133_v41, %v145_v40 }
 0x16c   :  { %v146_v42 = vmul.f32 %v2127_v37, %v138_v39 }
 0x16e   :  { %v154_v44 = vadd.f32 %v2133_v41, %v146_v42 }
 0x170   :  { %v155_v46 = vpack.c.bf16 %v154_v44, %v153_v43 }
 0x172   :  { %1659 = vmatmul.mubr.msk.bf16.vlgmr.msra.gmra.mxu0 %vm97_vm0, %v155_v46  ;;  %1667 = vmatmul.mubr.msk.bf16.vlgmr.msra.gmra.mxu1 %vm97_vm0, %v155_v46 }
 0x173   :  { %1671 = vmatpush3.bf16.msra.mxu0 %v1836_v45  ;;  %1674 = vmatprep.mubr.msk.bf16.mxu0 %vm1986_vm1, %v1985_v16 }
 0x174   :  { %1672 = vmatprep.subr.bf16.mxu0 %v1985_v16  ;;  %1680 = vmatprep.mubr.msk.bf16.mxu1 %vm1986_vm1, %v1985_v16 }
 0x177   :  { %1673 = vmatpush3.bf16.msra.mxu0 %v1837_v47 }
 0x178   :  { %1684 = vmatprep.subr.bf16.mxu0 %v1985_v16 }
 0x17a   :  { %1675 = vmatmul.mubr.msk.bf16.vlgmr.msra.gmra.mxu0 %vm97_vm0, %v155_v46 }
 0x17b   :  { %1686 = vmatprep.mubr.msk.bf16.mxu0 %vm1986_vm1, %v1985_v16 }
 0x232   :  { %v216_v50 = vpop.f32.mrf.mxu0  ;;  %v280_v51 = vpop.f32.mrf.mxu1 }
 0x233   :  { %v281_v52 = vadd.f32 %v1564_v48, %v280_v51  ;;  %v217_v55 = vadd.f32 %v1560_v49, %v216_v50 }
 0x234   :  { %v1660_v53 = vpop.f32.mrf.mxu0  ;;  %v1668_v54 = vpop.f32.mrf.mxu1 }
 0x235   :  { %v2155_v56 = vpack.c.bf16 %v281_v52, %v281_v52  ;;  %v351_v2 = vmul.f32 0.35355338, %v217_v55 }
 0x236   :  { %v219_v57 = vpop.f32.mrf.mxu0  ;;  %v283_v58 = vpop.f32.mrf.mxu1 }
 0x237   :  { %v284_v59 = vadd.f32 %v1564_v48, %v283_v58  ;;  %v364_v60 = vsel %vm359_vm6, %v2155_v56, 0  ;;  %v220_v3 = vadd.f32 %v1560_v49, %v219_v57  ;;  %v2167_v9 = vpack.c.bf16 %v351_v2, %v351_v2 }
 0x238   :  { %v1661_v61 = vpop.f32.mrf.mxu0  ;;  %v1669_v62 = vpop.f32.mrf.mxu1  ;;  %1679 = vmatpush3.bf16.xpose.msra.mxu1 %v364_v60 }
 0x239   :  { %v2162_v4 = vpack.c.bf16 %v284_v59, %v284_v59  ;;  %1690 = vmatprep.subr.bf16.mxu1 %v1985_v16  ;;  %v352_v10 = vmul.f32 0.35355338, %v220_v3 }
 0x23a   :  { %v344_v5 = vpop.f32.mrf.mxu0 }
 0x23b   :  { %v345_v6 = vadd.f32 %v1568_v63, %v344_v5  ;;  %v410_v7 = vsel %vm359_vm6, %v2162_v4, 0  ;;  %v2178_v17 = vpack.c.bf16 %v352_v10, %v352_v10 }
 0x23c   :  { %v1676_v8 = vpop.f32.mrf.mxu0  ;;  %1685 = vmatpush3.bf16.xpose.msra.mxu0 %v410_v7 }
 0x23d   :  { %v2169_v11 = vpack.c.bf16 %v345_v6, %v345_v6  ;;  %1696 = vmatprep.subr.bf16.mxu0 %v1985_v16 }
 0x23e   :  { %v347_v12 = vpop.f32.mrf.mxu0 }
 0x23f   :  { %v348_v13 = vadd.f32 %v1568_v63, %v347_v12  ;;  %1681 = vmatmul.mubr.msk.bf16.vlgmr.msra.gmra.mxu1 %vm359_vm6, %v2167_v9  ;;  %v481_v14 = vsel %vm479_vm7, %v2169_v11, 0 }
 0x240   :  { %v1677_v15 = vpop.f32.mrf.mxu0  ;;  %1691 = vmatpush3.bf16.msra.mxu1 %v481_v14  ;;  %1692 = vmatprep.mubr.msk.bf16.mxu1 %vm1986_vm1, %v1985_v16 }
 0x241   :  { %v2180_v18 = vpack.c.bf16 %v348_v13, %v348_v13  ;;  %1702 = vmatprep.subr.bf16.mxu1 %v1985_v16 }
 0x243   :  { %1687 = vmatmul.mubr.msk.bf16.vlgmr.msra.gmra.mxu0 %vm359_vm6, %v2178_v17  ;;  %v527_v19 = vsel %vm479_vm7, %v2180_v18, 0 }
 0x244   :  { %1697 = vmatpush3.bf16.msra.mxu0 %v527_v19  ;;  %1698 = vmatprep.mubr.msk.bf16.mxu0 %vm1986_vm1, %v1985_v16 }
 0x245   :  { %1708 = vmatprep.subr.bf16.mxu0 %v1985_v16 }
 0x2ff   :  { %v400_v20 = vpop.f32.mrf.mxu1 }
 0x300   :  { %v452_v21 = vsel %vm359_vm6, %v400_v20, -inf }
 0x301   :  { %453 = vmax.xlane.f32.xlu0 %v452_v21  ;;  %v1682_v22 = vpop.f32.mrf.mxu1 }
 0x303   :  { %v403_v23 = vpop.f32.mrf.mxu1  ;;  %v446_v24 = vpop.f32.mrf.mxu0 }
 0x304   :  { %v455_v25 = vsel %vm359_vm6, %v446_v24, -inf }
 0x305   :  { %v1683_v26 = vpop.f32.mrf.mxu1  ;;  %456 = vmax.xlane.f32.xlu1 %v455_v25  ;;  %v1688_v27 = vpop.f32.mrf.mxu0 }
 0x307   :  { %v449_v28 = vpop.f32.mrf.mxu0 }
 0x309   :  { %v1689_v29 = vpop.f32.mrf.mxu0 }
 0x316   :  { %625 = vrot.lane.b32.xlu1 %v2162_v4, %s1987_s6 }
 0x38a   :  { %v454_v30 = vpop.xlane.xlu0 %453 }
 0x38b   :  { %v458_v31 = vsub.f32 %v400_v20, %v454_v30 }
 0x38d   :  { %v460_v32 = vmul.f32 1.442695, %v458_v31 }
 0x38e   :  { %v457_v33 = vpop.xlane.xlu1 %456 }
 0x38f   :  { %1854 = vpow2.f32 %v460_v32  ;;  %v459_v34 = vsub.f32 %v446_v24, %v457_v33 }
 0x391   :  { %v462_v35 = vmul.f32 1.442695, %v459_v34 }
 0x392   :  { %v626_v42 = vpop.permute.xlu1 %625 }
 0x393   :  { %1856 = vpow2.f32 %v462_v35  ;;  %v631_v53 = vsel %vm359_vm6, %v626_v42, 0 }
 0x39c   :  { %v1855_v36 = vpop.eup %1854 }
 0x39d   :  { %v464_v38 = vsel %vm359_vm6, %v1855_v36, 0.0 }
 0x39e   :  { %465 = vadd.xlane.f32.xlu0 %v464_v38 }
 0x3a0   :  { %v1857_v39 = vpop.eup %1856 }
 0x3a1   :  { %v467_v40 = vsel %vm359_vm6, %v1857_v39, 0.0 }
 0x3a2   :  { %468 = vadd.xlane.f32.xlu1 %v467_v40 }
 0x3b3   :  { %570 = vrot.lane.b32.xlu1 %v2167_v9, %s1987_s6 }
 0x3b4   :  { %573 = vrot.lane.b32.xlu0 %v2155_v56, %s1987_s6 }
 0x3b7   :  { %622 = vrot.lane.b32.xlu1 %v2178_v17, %s1987_s6 }
 0x427   :  { %v466_v43 = vpop.xlane.xlu0 %465 }
 0x428   :  { %1858 = vrcp.f32 %v466_v43 }
 0x42b   :  { %v469_v44 = vpop.xlane.xlu1 %468  ;;  %v574_v47 = vpop.permute.xlu0 %573 }
 0x42c   :  { %1860 = vrcp.f32 %v469_v44  ;;  %v579_v50 = vsel %vm359_vm6, %v574_v47, 0 }
 0x42f   :  { %v571_v54 = vpop.permute.xlu1 %570 }
 0x433   :  { %v623_v55 = vpop.permute.xlu1 %622 }
 0x435   :  { %v1859_v45 = vpop.eup %1858 }
 0x436   :  { %v472_v46 = vmul.f32 %v1859_v45, %v1855_v36 }
 0x438   :  { %v474_v48 = vpack.c.bf16 %v472_v46, %v472_v46 }
 0x439   :  { %v1861_v49 = vpop.eup %1860 }
 0x43a   :  { %1693 = vmatmul.mubr.msk.bf16.vlgmr.msra.gmra.mxu1 %vm359_vm6, %v474_v48  ;;  %v473_v51 = vmul.f32 %v1861_v49, %v1857_v39 }
 0x43b   :  { %1703 = vmatpush3.bf16.xpose.msra.mxu1 %v579_v50  ;;  %1704 = vmatprep.mubr.msk.bf16.mxu1 %vm1986_vm1, %v1985_v16 }
 0x43c   :  { %v475_v52 = vpack.c.bf16 %v473_v51, %v473_v51  ;;  %1714 = vmatprep.subr.bf16.mxu1 %v1985_v16 }
 0x43e   :  { %1699 = vmatmul.mubr.msk.bf16.vlgmr.msra.gmra.mxu0 %vm359_vm6, %v475_v52 }
 0x43f   :  { %1709 = vmatpush3.bf16.xpose.msra.mxu0 %v631_v53  ;;  %1710 = vmatprep.mubr.msk.bf16.mxu0 %vm1986_vm1, %v1985_v16 }
 0x440   :  { %1720 = vmatprep.subr.bf16.mxu0 %v1985_v16 }
 0x442   :  { %1705 = vmatmul.mubr.msk.bf16.vlgmr.msra.gmra.mxu1 %vm359_vm6, %v571_v54 }
 0x443   :  { %1716 = vmatprep.mubr.msk.bf16.mxu1 %vm1986_vm1, %v1985_v16 }
 0x446   :  { %1711 = vmatmul.mubr.msk.bf16.vlgmr.msra.gmra.mxu0 %vm359_vm6, %v623_v55 }
 0x447   :  { %1722 = vmatprep.mubr.msk.bf16.mxu0 %vm1986_vm1, %v1985_v16 }
 0x4fa   :  { %v2218_v57 = vpop.f32.mrf.mxu1 }
 0x4fc   :  { %v1694_v58 = vpop.f32.mrf.mxu1 }
 0x4fe   :  { %v520_v59 = vpop.f32.mrf.mxu1  ;;  %v2220_v60 = vpop.f32.mrf.mxu0 }
 0x500   :  { %v1695_v61 = vpop.f32.mrf.mxu1  ;;  %v1700_v62 = vpop.f32.mrf.mxu0 }
 0x502   :  { %v566_v63 = vpop.f32.mrf.mxu0  ;;  %v615_v2 = vpop.f32.mrf.mxu1 }
 0x503   :  { %v673_v3 = vsel %vm359_vm6, %v615_v2, -inf }
 0x504   :  { %674 = vmax.xlane.f32.xlu0 %v673_v3  ;;  %v1701_v5 = vpop.f32.mrf.mxu0  ;;  %v1706_v6 = vpop.f32.mrf.mxu1 }
 0x506   :  { %v618_v7 = vpop.f32.mrf.mxu1  ;;  %v667_v8 = vpop.f32.mrf.mxu0 }
 0x507   :  { %v676_v10 = vsel %vm359_vm6, %v667_v8, -inf }
 0x508   :  { %v1707_v12 = vpop.f32.mrf.mxu1  ;;  %677 = vmax.xlane.f32.xlu1 %v676_v10  ;;  %v1712_v13 = vpop.f32.mrf.mxu0 }
 0x50a   :  { %v670_v14 = vpop.f32.mrf.mxu0 }
 0x50c   :  { %v1713_v15 = vpop.f32.mrf.mxu0 }
 0x519   :  { %747 = vrot.lane.b32.xlu1 %v2180_v18, %s1987_s6 }
 0x51d   :  { %797 = vrot.lane.b32.xlu1 %v2155_v56, %s1988_s17 }
 0x521   :  { %847 = vrot.lane.b32.xlu1 %v2162_v4, %s1988_s17 }
 0x525   :  { %845 = vrot.lane.b32.xlu1 %v2178_v17, %s1988_s17 }
 0x58d   :  { %v675_v19 = vpop.xlane.xlu0 %674 }
 0x58e   :  { %v679_v20 = vsub.f32 %v615_v2, %v675_v19 }
 0x590   :  { %v681_v21 = vmul.f32 1.442695, %v679_v20 }
 0x591   :  { %v678_v22 = vpop.xlane.xlu1 %677 }
 0x592   :  { %1862 = vpow2.f32 %v681_v21  ;;  %v680_v23 = vsub.f32 %v667_v8, %v678_v22 }
 0x594   :  { %v683_v24 = vmul.f32 1.442695, %v680_v23 }
 0x595   :  { %v748_v25 = vpop.permute.xlu1 %747 }
 0x596   :  { %1864 = vpow2.f32 %v683_v24  ;;  %v753_v26 = vsel %vm479_vm7, %v748_v25, 0 }
 0x597   :  { %1721 = vmatpush3.bf16.msra.mxu0 %v753_v26 }
 0x598   :  { %1732 = vmatprep.subr.bf16.mxu0 %v1985_v16 }
 0x599   :  { %v798_v36 = vpop.permute.xlu1 %797 }
 0x59a   :  { %v803_v42 = vsel %vm359_vm6, %v798_v36, 0 }
 0x59d   :  { %v848_v44 = vpop.permute.xlu1 %847 }
 0x59e   :  { %v853_v46 = vsel %vm359_vm6, %v848_v44, 0 }
 0x59f   :  { %v1863_v27 = vpop.eup %1862 }
 0x5a0   :  { %v685_v28 = vsel %vm359_vm6, %v1863_v27, 0.0 }
 0x5a1   :  { %686 = vadd.xlane.f32.xlu0 %v685_v28  ;;  %v846_v48 = vpop.permute.xlu1 %845 }
 0x5a3   :  { %v1865_v29 = vpop.eup %1864 }
 0x5a4   :  { %v688_v30 = vsel %vm359_vm6, %v1865_v29, 0.0 }
 0x5a5   :  { %689 = vadd.xlane.f32.xlu0 %v688_v30 }
 0x5bb   :  { %698 = vrot.lane.b32.xlu0 %v2169_v11, %s1987_s6 }
 0x5bf   :  { %795 = vrot.lane.b32.xlu0 %v2167_v9, %s1988_s17 }
 0x62a   :  { %v687_v31 = vpop.xlane.xlu0 %686 }
 0x62b   :  { %1866 = vrcp.f32 %v687_v31 }
 0x62e   :  { %v690_v32 = vpop.xlane.xlu0 %689 }
 0x62f   :  { %1868 = vrcp.f32 %v690_v32 }
 0x632   :  { %v699_v33 = vpop.permute.xlu0 %698 }
 0x633   :  { %v704_v34 = vsel %vm479_vm7, %v699_v33, 0 }
 0x634   :  { %1715 = vmatpush3.bf16.msra.mxu1 %v704_v34 }
 0x635   :  { %1726 = vmatprep.subr.bf16.mxu1 %v1985_v16 }
 0x636   :  { %v796_v47 = vpop.permute.xlu0 %795 }
 0x638   :  { %v1867_v35 = vpop.eup %1866 }
 0x639   :  { %v693_v38 = vmul.f32 %v1867_v35, %v1863_v27 }
 0x63b   :  { %v695_v39 = vpack.c.bf16 %v693_v38, %v693_v38 }
 0x63c   :  { %v1869_v40 = vpop.eup %1868 }
 0x63d   :  { %1717 = vmatmul.mubr.msk.bf16.vlgmr.msra.gmra.mxu1 %vm359_vm6, %v695_v39  ;;  %v694_v43 = vmul.f32 %v1869_v40, %v1865_v29 }
 0x63e   :  { %1727 = vmatpush3.bf16.xpose.msra.mxu1 %v803_v42  ;;  %1728 = vmatprep.mubr.msk.bf16.mxu1 %vm1986_vm1, %v1985_v16 }
 0x63f   :  { %v696_v45 = vpack.c.bf16 %v694_v43, %v694_v43  ;;  %1738 = vmatprep.subr.bf16.mxu1 %v1985_v16 }
 0x641   :  { %1723 = vmatmul.mubr.msk.bf16.vlgmr.msra.gmra.mxu0 %vm359_vm6, %v696_v45 }
 0x642   :  { %1733 = vmatpush3.bf16.xpose.msra.mxu0 %v853_v46  ;;  %1734 = vmatprep.mubr.msk.bf16.mxu0 %vm1986_vm1, %v1985_v16 }
 0x643   :  { %1744 = vmatprep.subr.bf16.mxu0 %v1985_v16 }
 0x645   :  { %1729 = vmatmul.mubr.msk.bf16.vlgmr.msra.gmra.mxu1 %vm359_vm6, %v796_v47 }
 0x646   :  { %1740 = vmatprep.mubr.msk.bf16.mxu1 %vm1986_vm1, %v1985_v16 }
 0x649   :  { %1735 = vmatmul.mubr.msk.bf16.vlgmr.msra.gmra.mxu0 %vm359_vm6, %v846_v48 }
 0x64a   :  { %1746 = vmatprep.mubr.msk.bf16.mxu0 %vm1986_vm1, %v1985_v16 }
 0x6fd   :  { %v2258_v49 = vpop.f32.mrf.mxu1 }
 0x6ff   :  { %v1718_v50 = vpop.f32.mrf.mxu1 }
 0x701   :  { %v743_v51 = vpop.f32.mrf.mxu1  ;;  %v2260_v52 = vpop.f32.mrf.mxu0 }
 0x702   :  { %v1817_v53 = vpack.i.bf16 %v2260_v52, %v2258_v49 }
 0x703   :  { %v1719_v54 = vpop.f32.mrf.mxu1  ;;  %v1724_v55 = vpop.f32.mrf.mxu0 }
 0x705   :  { %v792_v58 = vpop.f32.mrf.mxu0  ;;  %v839_v59 = vpop.f32.mrf.mxu1 }
 0x706   :  { %v895_v61 = vsel %vm359_vm6, %v839_v59, -inf }
 0x707   :  { %896 = vmax.xlane.f32.xlu0 %v895_v61  ;;  %v1725_v62 = vpop.f32.mrf.mxu0  ;;  %v1730_v63 = vpop.f32.mrf.mxu1 }
 0x709   :  { %v842_v2 = vpop.f32.mrf.mxu1  ;;  %v889_v3 = vpop.f32.mrf.mxu0 }
 0x70a   :  { %v898_v5 = vsel %vm359_vm6, %v889_v3, -inf }
 0x70b   :  { %v1731_v6 = vpop.f32.mrf.mxu1  ;;  %899 = vmax.xlane.f32.xlu1 %v898_v5  ;;  %v1736_v7 = vpop.f32.mrf.mxu0 }
 0x70d   :  { %v892_v8 = vpop.f32.mrf.mxu0 }
 0x70f   :  { %v1737_v10 = vpop.f32.mrf.mxu0 }
 0x71c   :  { %967 = vrot.lane.b32.xlu1 %v2180_v18, %s1988_s17 }
 0x720   :  { %1017 = vrot.lane.b32.xlu1 %v2155_v56, %s1989_s7 }
 0x724   :  { %1067 = vrot.lane.b32.xlu1 %v2162_v4, %s1989_s7 }
 0x728   :  { %1065 = vrot.lane.b32.xlu1 %v2178_v17, %s1989_s7 }
 0x790   :  { %v897_v12 = vpop.xlane.xlu0 %896 }
 0x791   :  { %v901_v13 = vsub.f32 %v839_v59, %v897_v12 }
 0x793   :  { %v903_v14 = vmul.f32 1.442695, %v901_v13 }
 0x794   :  { %v900_v15 = vpop.xlane.xlu1 %899 }
 0x795   :  { %1870 = vpow2.f32 %v903_v14  ;;  %v902_v19 = vsub.f32 %v889_v3, %v900_v15 }
 0x797   :  { %v905_v20 = vmul.f32 1.442695, %v902_v19 }
 0x798   :  { %v968_v21 = vpop.permute.xlu1 %967 }
 0x799   :  { %1872 = vpow2.f32 %v905_v20  ;;  %v973_v22 = vsel %vm479_vm7, %v968_v21, 0 }
 0x79a   :  { %1745 = vmatpush3.bf16.msra.mxu0 %v973_v22 }
 0x79b   :  { %1756 = vmatprep.subr.bf16.mxu0 %v1985_v16 }
 0x79c   :  { %v1018_v29 = vpop.permute.xlu1 %1017 }
 0x79d   :  { %v1023_v33 = vsel %vm359_vm6, %v1018_v29, 0 }
 0x7a0   :  { %v1068_v34 = vpop.permute.xlu1 %1067 }
 0x7a1   :  { %v1073_v36 = vsel %vm359_vm6, %v1068_v34, 0 }
 0x7a2   :  { %v1871_v56 = vpop.eup %1870 }
 0x7a3   :  { %v907_v4 = vsel %vm359_vm6, %v1871_v56, 0.0 }
 0x7a4   :  { %908 = vadd.xlane.f32.xlu0 %v907_v4  ;;  %v1066_v39 = vpop.permute.xlu1 %1065 }
 0x7a6   :  { %v1873_v23 = vpop.eup %1872 }
 0x7a7   :  { %v910_v17 = vsel %vm359_vm6, %v1873_v23, 0.0 }
 0x7a8   :  { %911 = vadd.xlane.f32.xlu0 %v910_v17 }
 0x7be   :  { %919 = vrot.lane.b32.xlu0 %v2169_v11, %s1988_s17 }
 0x7c2   :  { %1015 = vrot.lane.b32.xlu0 %v2167_v9, %s1989_s7 }
 0x82d   :  { %v909_v24 = vpop.xlane.xlu0 %908 }
 0x82e   :  { %1874 = vrcp.f32 %v909_v24  ;;  %v1838_v24 = vld [vmem:[#allocation5 + $0x8] sm:$0xff]  }
 0x831   :  { %v912_v25 = vpop.xlane.xlu0 %911 }
 0x832   :  { %1876 = vrcp.f32 %v912_v25  ;;  %v1839_v25 = vld [vmem:[#allocation5] sm:$0xff]  }
 0x835   :  { %v920_v26 = vpop.permute.xlu0 %919 }
 0x836   :  { %v925_v27 = vsel %vm479_vm7, %v920_v26, 0 }
 0x837   :  { %1739 = vmatpush3.bf16.msra.mxu1 %v925_v27 }
 0x838   :  { %1750 = vmatprep.subr.bf16.mxu1 %v1985_v16 }
 0x839   :  { %v1016_v38 = vpop.permute.xlu0 %1015 }
 0x83b   :  { %v1875_v28 = vpop.eup %1874 }
 0x83c   :  { %v915_v30 = vmul.f32 %v1875_v28, %v1871_v56 }
 0x83e   :  { %v917_v31 = vpack.c.bf16 %v915_v30, %v915_v30 }
 0x83f   :  { %v1877_v32 = vpop.eup %1876 }
 0x840   :  { %1741 = vmatmul.mubr.msk.bf16.vlgmr.msra.gmra.mxu1 %vm359_vm6, %v917_v31  ;;  %v916_v9 = vmul.f32 %v1877_v32, %v1873_v23 }
 0x841   :  { %1751 = vmatpush3.bf16.xpose.msra.mxu1 %v1023_v33  ;;  %1752 = vmatprep.mubr.msk.bf16.mxu1 %vm1986_vm1, %v1985_v16 }
 0x842   :  { %v918_v35 = vpack.c.bf16 %v916_v9, %v916_v9  ;;  %1762 = vmatprep.subr.bf16.mxu1 %v1985_v16 }
 0x844   :  { %1747 = vmatmul.mubr.msk.bf16.vlgmr.msra.gmra.mxu0 %vm359_vm6, %v918_v35 }
 0x845   :  { %1757 = vmatpush3.bf16.xpose.msra.mxu0 %v1073_v36  ;;  %1758 = vmatprep.mubr.msk.bf16.mxu0 %vm1986_vm1, %v1985_v16 }
 0x846   :  { %1768 = vmatprep.subr.bf16.mxu0 %v1985_v16 }
 0x848   :  { %1753 = vmatmul.mubr.msk.bf16.vlgmr.msra.gmra.mxu1 %vm359_vm6, %v1016_v38 }
 0x849   :  { %1764 = vmatprep.mubr.msk.bf16.mxu1 %vm1986_vm1, %v1985_v16 }
 0x84c   :  { %1759 = vmatmul.mubr.msk.bf16.vlgmr.msra.gmra.mxu0 %vm359_vm6, %v1066_v39 }
 0x84d   :  { %1770 = vmatprep.mubr.msk.bf16.mxu0 %vm1986_vm1, %v1985_v16 }
 0x900   :  { %v961_v40 = vpop.f32.mrf.mxu1 }
 0x902   :  { %v1742_v42 = vpop.f32.mrf.mxu1 }
 0x904   :  { %v964_v43 = vpop.f32.mrf.mxu1  ;;  %v1009_v44 = vpop.f32.mrf.mxu0 }
 0x905   :  { %v1822_v3 = vpack.i.bf16 %v1009_v44, %v961_v40 }
 0x906   :  { %v1743_v45 = vpop.f32.mrf.mxu1  ;;  %v1748_v46 = vpop.f32.mrf.mxu0 }
 0x908   :  { %v1012_v47 = vpop.f32.mrf.mxu0  ;;  %v1059_v48 = vpop.f32.mrf.mxu1 }
 0x909   :  { %v1115_v50 = vsel %vm359_vm6, %v1059_v48, -inf }
 0x90a   :  { %1116 = vmax.xlane.f32.xlu0 %v1115_v50  ;;  %v1749_v51 = vpop.f32.mrf.mxu0  ;;  %v1754_v54 = vpop.f32.mrf.mxu1 }
 0x90c   :  { %v1062_v55 = vpop.f32.mrf.mxu1  ;;  %v1109_v58 = vpop.f32.mrf.mxu0 }
 0x90d   :  { %v1118_v59 = vsel %vm359_vm6, %v1109_v58, -inf  ;;  %v1588_v55 = vld [vmem:[%s2391_s8] ss:$0 sm:$0xff] }
 0x90e   :  { %v1755_v61 = vpop.f32.mrf.mxu1  ;;  %1119 = vmax.xlane.f32.xlu1 %v1118_v59  ;;  %v1760_v62 = vpop.f32.mrf.mxu0 }
 0x910   :  { %v1112_v63 = vpop.f32.mrf.mxu0 }
 0x912   :  { %v1761_v2 = vpop.f32.mrf.mxu0 }
 0x91f   :  { %1187 = vrot.lane.b32.xlu1 %v2180_v18, %s1989_s7 }
 0x923   :  { %1818 = vrot.lane.b32.xlu1 %v1817_v53, %s1990_s18 }
 0x927   :  { %1823 = vrot.lane.b32.xlu1 %v1822_v3, %s1991_s5 }
 0x993   :  { %v1117_v5 = vpop.xlane.xlu0 %1116 }
 0x994   :  { %v1121_v6 = vsub.f32 %v1059_v48, %v1117_v5 }
 0x996   :  { %v1123_v7 = vmul.f32 1.442695, %v1121_v6 }
 0x997   :  { %v1120_v8 = vpop.xlane.xlu1 %1119 }
 0x998   :  { %1878 = vpow2.f32 %v1123_v7  ;;  %v1122_v10 = vsub.f32 %v1109_v58, %v1120_v8 }
 0x99a   :  { %v1125_v12 = vmul.f32 1.442695, %v1122_v10 }
 0x99b   :  { %v1188_v13 = vpop.permute.xlu1 %1187 }
 0x99c   :  { %1880 = vpow2.f32 %v1125_v12  ;;  %v1193_v18 = vsel %vm479_vm7, %v1188_v13, 0 }
 0x99d   :  { %1769 = vmatpush3.bf16.msra.mxu0 %v1193_v18 }
 0x99e   :  { %1782 = vmatprep.subr.bf16.mxu0 %v1985_v16 }
 0x99f   :  { %v1819_v34 = vpop.permute.xlu1 %1818 }
 0x9a0   :  { %v1821_v36 = vunpack.i.h.bf16 %v1819_v34  ;;  %v1820_v38 = vunpack.i.l.bf16 %v1819_v34 }
 0x9a2   :  { %v1260_v43 = vsel %vm359_vm6, %v2220_v60, %v1821_v36  ;;  %v1259_v44 = vsel %vm359_vm6, %v2218_v57, %v1820_v38 }
 0x9a3   :  { %v1824_v35 = vpop.permute.xlu1 %1823 }
 0x9a4   :  { %v1826_v39 = vunpack.i.h.bf16 %v1824_v35  ;;  %v1825_v40 = vunpack.i.l.bf16 %v1824_v35 }
 0x9a5   :  { %v1879_v14 = vpop.eup %1878 }
 0x9a6   :  { %v1127_v49 = vsel %vm359_vm6, %v1879_v14, 0.0  ;;  %v1262_v47 = vsel %vm1261_vm8, %v1259_v44, %v1825_v40  ;;  %v1263_v48 = vsel %vm1261_vm8, %v1260_v43, %v1826_v39  ;;  %v1843_v39 = vld [vmem:[%s2396_s13 + $0x10] sm:$0xff]   ;;  %v1844_v40 = vld [vmem:[%s2396_s13 + $0x8] sm:$0xff]  }
 0x9a7   :  { %1128 = vadd.xlane.f32.xlu0 %v1127_v49  ;;  %v1840_v49 = vld [vmem:[#allocation7 + $0x8] sm:$0xff]  }
 0x9a9   :  { %v1881_v52 = vpop.eup %1880 }
 0x9aa   :  { %v1130_v53 = vsel %vm359_vm6, %v1881_v52, 0.0 }
 0x9ab   :  { %1131 = vadd.xlane.f32.xlu0 %v1130_v53  ;;  %v1842_v53 = vld [vmem:[%s2396_s13 + $0x18] sm:$0xff]  }
 0x9c1   :  { %1139 = vrot.lane.b32.xlu0 %v2169_v11, %s1989_s7 }
 0xa30   :  { %v1129_v15 = vpop.xlane.xlu0 %1128 }
 0xa31   :  { %1882 = vrcp.f32 %v1129_v15 }
 0xa34   :  { %v1132_v19 = vpop.xlane.xlu0 %1131 }
 0xa35   :  { %1884 = vrcp.f32 %v1132_v19 }
 0xa38   :  { %v1140_v20 = vpop.permute.xlu0 %1139 }
 0xa39   :  { %v1145_v21 = vsel %vm479_vm7, %v1140_v20, 0 }
 0xa3a   :  { %1763 = vmatpush3.bf16.msra.mxu1 %v1145_v21 }
 0xa3b   :  { %1774 = vmatprep.subr.bf16.mxu1 %v1985_v16 }
 0xa3e   :  { %v1883_v22 = vpop.eup %1882 }
 0xa3f   :  { %v1135_v56 = vmul.f32 %v1883_v22, %v1879_v14 }
 0xa41   :  { %v1137_v4 = vpack.c.bf16 %v1135_v56, %v1135_v56 }
 0xa42   :  { %v1885_v23 = vpop.eup %1884 }
 0xa43   :  { %1765 = vmatmul.mubr.msk.bf16.vlgmr.msra.gmra.mxu1 %vm359_vm6, %v1137_v4  ;;  %v1136_v17 = vmul.f32 %v1885_v23, %v1881_v52  ;;  %v1841_v52 = vld [vmem:[#allocation7] sm:$0xff]  }
 0xa44   :  { %1778 = vmatprep.mubr.msk.bf16.mxu1 %vm1986_vm1, %v1985_v16  ;;  %1775 = vmatpush3.bf16.msra.mxu1 %v1838_v24 }
 0xa45   :  { %v1138_v11 = vpack.c.bf16 %v1136_v17, %v1136_v17  ;;  %1776 = vmatprep.subr.bf16.mxu1 %v1985_v16 }
 0xa47   :  { %1771 = vmatmul.mubr.msk.bf16.vlgmr.msra.gmra.mxu0 %vm359_vm6, %v1138_v11 }
 0xa48   :  { %1786 = vmatprep.mubr.msk.bf16.mxu0 %vm1986_vm1, %v1985_v16  ;;  %1777 = vmatpush3.bf16.msra.mxu1 %v1839_v25 }
 0xa49   :  { %1790 = vmatprep.subr.bf16.mxu1 %v1985_v16  ;;  %1783 = vmatpush3.bf16.msra.mxu0 %v1840_v49 }
 0xa4a   :  { %1784 = vmatprep.subr.bf16.mxu0 %v1985_v16 }
 0xa4d   :  { %1785 = vmatpush3.bf16.msra.mxu0 %v1841_v52 }
 0xb03   :  { %v1181_v26 = vpop.f32.mrf.mxu1 }
 0xb05   :  { %v1766_v27 = vpop.f32.mrf.mxu1 }
 0xb07   :  { %v1184_v28 = vpop.f32.mrf.mxu1  ;;  %v1229_v29 = vpop.f32.mrf.mxu0 }
 0xb08   :  { %v1827_v30 = vpack.i.bf16 %v1229_v29, %v1181_v26 }
 0xb09   :  { %v1767_v31 = vpop.f32.mrf.mxu1  ;;  %v1772_v32 = vpop.f32.mrf.mxu0 }
 0xb0a   :  { %1828 = vrot.lane.b32.xlu0 %v1827_v30, %s1992_s19 }
 0xb0b   :  { %v1232_v33 = vpop.f32.mrf.mxu0 }
 0xb0d   :  { %v1773_v9 = vpop.f32.mrf.mxu0 }
 0xb7c   :  { %v1829_v42 = vpop.permute.xlu0 %1828 }
 0xb7d   :  { %v1831_v45 = vunpack.i.h.bf16 %v1829_v42  ;;  %v1830_v46 = vunpack.i.l.bf16 %v1829_v42 }
 0xb7f   :  { %v1266_v50 = vsel %vm1264_vm9, %v1263_v48, %v1831_v45  ;;  %v1265_v51 = vsel %vm1264_vm9, %v1262_v47, %v1830_v46 }
 0xb80   :  { %v1267_v54 = vpack.c.bf16 %v1266_v50, %v1265_v51 }
 0xb82   :  { %1779 = vmatmul.mubr.msk.bf16.vlgmr.msra.gmra.mxu1 %vm97_vm0, %v1267_v54 }
 0xb83   :  { %1798 = vmatprep.mubr.msk.bf16.mxu1 %vm1986_vm1, %v1985_v16  ;;  %1791 = vmatpush3.bf16.msra.mxu1 %v1842_v53 }
 0xb84   :  { %1792 = vmatprep.subr.bf16.mxu1 %v1985_v16 }
 0xb87   :  { %1793 = vmatpush3.bf16.msra.mxu1 %v1843_v39 }
 0xb88   :  { %1794 = vmatprep.subr.bf16.mxu1 %v1985_v16 }
 0xb8b   :  { %1795 = vmatpush3.bf16.msra.mxu1 %v1844_v40 }
 0xb8c   :  { %1796 = vmatprep.subr.bf16.mxu1 %v1985_v16  ;;  %v1596_v16 = vld [vmem:[%s2397_s14] ss:$0 sm:$0xff] }
 0xc42   :  { %v1328_v60 = vpop.f32.mrf.mxu1 }
 0xc43   :  { %v1329_v58 = vadd.f32 %v1588_v55, %v1328_v60 }
 0xc44   :  { %v1780_v59 = vpop.f32.mrf.mxu1 }
 0xc45   :  { %v2335_v57 = vadd.f32 %v1329_v58, %v2087_v0 }
 0xc46   :  { %v1331_v61 = vpop.f32.mrf.mxu1 }
 0xc47   :  { %v1332_v62 = vadd.f32 %v1588_v55, %v1331_v61  ;;  %v1337_v63 = vsel %vm97_vm0, %v2335_v57, 0.0 }
 0xc48   :  { %1338 = vadd.xlane.f32.xlu1 %v1337_v63  ;;  %v1781_v2 = vpop.f32.mrf.mxu1 }
 0xc49   :  { %v2340_v3 = vadd.f32 %v1332_v62, %v2092_v1 }
 0xc4b   :  { %v1340_v5 = vsel %vm97_vm0, %v2340_v3, 0.0 }
 0xc4c   :  { %1341 = vadd.xlane.f32.xlu0 %v1340_v5 }
 0xcd1   :  { %v1339_v6 = vpop.xlane.xlu1 %1338 }
 0xcd2   :  { %v1343_v7 = vmul.f32 0.03125, %v1339_v6 }
 0xcd4   :  { %v1345_v8 = vsub.f32 %v2335_v57, %v1343_v7 }
 0xcd5   :  { %v1342_v0 = vpop.xlane.xlu0 %1341 }
 0xcd6   :  { %v1344_v10 = vmul.f32 0.03125, %v1342_v0  ;;  %v1347_v12 = vmul.f32 %v1345_v8, %v1345_v8 }
 0xcd8   :  { %v1346_v13 = vsub.f32 %v2340_v3, %v1344_v10  ;;  %v1349_v18 = vsel %vm97_vm0, %v1347_v12, 0.0 }
 0xcd9   :  { %1350 = vadd.xlane.f32.xlu0 %v1349_v18 }
 0xcda   :  { %v1348_v14 = vmul.f32 %v1346_v13, %v1346_v13 }
 0xcdc   :  { %v1352_v1 = vsel %vm97_vm0, %v1348_v14, 0.0 }
 0xcdd   :  { %1353 = vadd.xlane.f32.xlu0 %v1352_v1 }
 0xd62   :  { %v1351_v15 = vpop.xlane.xlu0 %1350 }
 0xd63   :  { %v1355_v19 = vmul.f32 0.032258064, %v1351_v15 }
 0xd65   :  { %1886 = vrsqrt.f32 %v1355_v19  ;;  %vm1359_vm10 = vcmp.eq.f32.partialorder %v1355_v19, inf  ;;  %v1362_v4 = vand.u32 2147483648, %v1355_v19  ;;  %vm1361_vm11 = vcmp.eq.f32.partialorder %v1355_v19, 0.0 }
 0xd66   :  { %v1354_v20 = vpop.xlane.xlu0 %1353 }
 0xd67   :  { %v1356_v21 = vmul.f32 0.032258064, %v1354_v20 }
 0xd69   :  { %1888 = vrsqrt.f32 %v1356_v21  ;;  %vm1366_vm12 = vcmp.eq.f32.partialorder %v1356_v21, inf  ;;  %v1369_v26 = vand.u32 2147483648, %v1356_v21  ;;  %vm1368_vm13 = vcmp.eq.f32.partialorder %v1356_v21, 0.0 }
 0xd72   :  { %v1887_v22 = vpop.eup %1886 }
 0xd73   :  { %v1358_v56 = vmul.f32 %v1887_v22, %v1355_v19 }
 0xd75   :  { %v1360_v23 = vsel %vm1359_vm10, %v1355_v19, %v1358_v56 }
 0xd76   :  { %v1889_v17 = vpop.eup %1888  ;;  %v1363_v11 = vsel %vm1361_vm11, %v1362_v4, %v1360_v23 }
 0xd77   :  { %v1371_v24 = vadd.f32 1e-06, %v1363_v11  ;;  %v1365_v25 = vmul.f32 %v1889_v17, %v1356_v21 }
 0xd79   :  { %1890 = vrcp.f32 %v1371_v24  ;;  %v1367_v27 = vsel %vm1366_vm12, %v1356_v21, %v1365_v25 }
 0xd7a   :  { %v1370_v28 = vsel %vm1368_vm13, %v1369_v26, %v1367_v27 }
 0xd7b   :  { %v1372_v29 = vadd.f32 1e-06, %v1370_v28 }
 0xd7d   :  { %1892 = vrcp.f32 %v1372_v29 }
 0xd86   :  { %v1891_v30 = vpop.eup %1890 }
 0xd87   :  { %v1375_v31 = vmul.f32 %v1891_v30, %v1345_v8 }
 0xd89   :  { %v1377_v9 = vmul.f32 %v2127_v37, %v1375_v31 }
 0xd8a   :  { %v1893_v32 = vpop.eup %1892 }
 0xd8b   :  { %v1376_v33 = vmul.f32 %v1893_v32, %v1346_v13  ;;  %v1379_v35 = vadd.f32 %v2133_v41, %v1377_v9 }
 0xd8d   :  { %v1378_v34 = vmul.f32 %v2127_v37, %v1376_v33  ;;  %v1845_v37 = vld [vmem:[%s2396_s13] sm:$0xff]  }
 0xd8e   :  { %1797 = vmatpush3.bf16.msra.mxu1 %v1845_v37 }
 0xd8f   :  { %v1380_v36 = vadd.f32 %v2133_v41, %v1378_v34  ;;  %v1592_v41 = vld [vmem:[%s2395_s12] ss:$0 sm:$0xff]  ;;  %s1993_s12 = smov [#allocation8]  }
 0xd90   :  { %s1545_s13 = sshll.u32 %s1993_s12, 4  ;;  %s1546_s13 = int_to_ptr.vmem [resolvable:$true] %s1545_s13 }
 0xd91   :  { %v1381_v38 = vpack.c.bf16 %v1380_v36, %v1379_v35  ;;  %s1954_s29 = scalar_lea.vmem %s1546_s13, 256  ;;  %p1959_p2 = scmp.lt.s32.totalorder %s1546_s13, %s1546_s13 }
 0xd92   :  { %p1955_p1 = scmp.ne.s32.totalorder %s1546_s13, %s1954_s29  ;;  %p1960_p3 = scmp.lt.s32.totalorder %s1954_s29, %s1954_s29 }
 0xd93   :  { %1787 = vmatmul.mubr.msk.bf16.vlgmr.msra.gmra.mxu0 %vm97_vm0, %v1381_v38 }
 0xd94   :  { %p1961_p4 = por %p1960_p3, %p1959_p2 }
 0xd96   :  { %p1962_p5 = pnand %p1961_p4, %p1955_p1 }
 0xe53   :  { %v1442_v42 = vpop.f32.mrf.mxu0 }
 0xe54   :  { %v1443_v44 = vadd.f32 %v1592_v41, %v1442_v42 }
 0xe55   :  { %v1788_v43 = vpop.f32.mrf.mxu0 }
 0xe56   :  { %v1449_v48 = vmax.f32 %v1443_v44, 0.0 }
 0xe57   :  { %v1445_v45 = vpop.f32.mrf.mxu0 }
 0xe58   :  { %v1446_v46 = vadd.f32 %v1592_v41, %v1445_v45 }
 0xe59   :  { %v1789_v47 = vpop.f32.mrf.mxu0 }
 0xe5a   :  { %v1450_v50 = vmax.f32 %v1446_v46, 0.0 }
 0xe5c   :  { %v1451_v51 = vpack.c.bf16 %v1450_v50, %v1449_v48 }
 0xe5e   :  { %1799 = vmatmul.mubr.msk.bf16.vlgmr.msra.gmra.mxu1 %vm1491_vm14, %v1451_v51 }
 0xf1e   :  { %v1529_v54 = vpop.f32.mrf.mxu1 }
 0xf1f   :  { %v1530_v55 = vadd.f32 %v1596_v16, %v1529_v54 }
 0xf20   :  { %v1800_v60 = vpop.f32.mrf.mxu1 }
 0xf21   :  { %v1536_v58 = vadd.f32 %v1530_v55, %v2335_v57 }
 0xf22   :  { %v1532_v59 = vpop.f32.mrf.mxu1 }
 0xf23   :  { %1538 = vst.msk [vmem:[#allocation8] sm:$0xff] %vm97_vm0, %v1536_v58  ;;  %v1533_v61 = vadd.f32 %v1596_v16, %v1532_v59 }
 0xf24   :  { %v1801_v62 = vpop.f32.mrf.mxu1 }
 0xf25   :  { %v1537_v63 = vadd.f32 %v1533_v61, %v2340_v3 }
 0xf27   :  { %1539 = vst.msk [vmem:[#allocation8 + $0x8] sm:$0xff] %vm97_vm0, %v1537_v63 }
 0xf28   :  { %1965 = shalt.err (!%p1962_p5)
}
 0xf29   :  { %s1994_s14 = smov 128  }
 0xf2a   :  { %1551 = dma.vmem_to_hbm [thread:$0]  %s1546_s13, 256, %s2398_s15, [#allocation4], %s1994_s14, %s1994_s14, %s1990_s18  }
 0xf2b   :  { %1978 = dma.done.wait [#allocation4], 256  }
 0xf2c   :  { %1979 = vsyncadd [#allocation4], 4294967040 }
 0xf2d   :  { %1555 = vsyncpa [#allocation3], 1 }
 0xf2e   :  { %1556 = vsyncpa [#allocation6], 1 }
 0xf2f   :  { %1557 = vsyncpa [#allocation4], 1 }

</bundles_post_ra>
